<compile_context>
chip_gen: v6e
topology: v6e:2x2x1
jax: 0.10.0
libtpu: 0.0.40
codegen_flags: <defaults>
</compile_context>

<pallas_src>
import functools

import numpy as np
import jax
import jax.numpy as jnp
from jax import lax
from jax.experimental import pallas as pl
from jax.experimental.pallas import tpu as pltpu

EPS = 1e-5

# Matmul-operand dtype for the banded-weight matmuls.  The review recommends bf16 on
# v5e/v6e/v7x (halves the weight DMA, ~3x fewer MXU passes for f32 operands); we keep
# f32 by default so the script validates tightly (2e-3) against the f32 reference.
# Flip to jnp.bfloat16 to take the DMA/MXU win; the tolerance in __main__ relaxes
# automatically (~3e-2) since bf16 operand rounding compounds over the three stages.
MATMUL_DTYPE = jnp.float32


# ----------------------------- fused Pallas kernel ---------------------------------
def _fused_decoder_kernel(a1_ref, w1_ref, w2_ref, e2_ref, w3_ref, e3_ref,
                          s_ref, st_ref, g1_ref, be1_ref, g2_ref, be2_ref,
                          g3_ref, be3_ref, o_ref, *, n, ho1, wo1, ho3, wo3, eps):
    f32 = jnp.float32
    md = MATMUL_DTYPE

    def bn_relu(y, g_ref, be_ref, count):
        """Train-mode BN (batch stats, biased var) + affine folded into one per-channel
        FMA, then ReLU.  y rows=(b, i), cols=(j, c) with c fastest; s_ref / st_ref map
        the (j, c) column axis to/from channels so no lane<->sublane relayout occurs."""
        colsum = jnp.sum(y, axis=0, keepdims=True)                         # (1, Wo*C)
        colsq = jnp.sum(y * y, axis=0, keepdims=True)                      # (1, Wo*C)
        stats = jnp.dot(jnp.concatenate([colsum, colsq], axis=0), s_ref[...],
                        preferred_element_type=f32)                        # (2, C)
        inv = 1.0 / count
        mean = stats[0:1, :] * inv
        var = stats[1:2, :] * inv - mean * mean                            # biased var
        scale_c = g_ref[...] * lax.rsqrt(var + eps)                        # (1, C)
        shift_c = be_ref[...] - mean * scale_c
        both = jnp.dot(jnp.concatenate([scale_c, shift_c], axis=0), st_ref[...],
                       preferred_element_type=f32)                         # (2, Wo*C)
        return jnp.maximum(y * both[0:1, :] + both[1:2, :], 0.0)

    # ---- stage 1: ConvT(16->16, k3, s2, p2, op1) + BN + ReLU -----------------------
    # Batch and the kh=3 taps are fused into M / K: a single
    # (n*ho1, 3*w*c) @ (3*w*c, wo1*c) matmul.
    y1 = jnp.dot(a1_ref[...].astype(md), w1_ref[...].astype(md),
                 preferred_element_type=f32)                               # (n*ho1, wo1*c)
    act1 = bn_relu(y1, g1_ref, be1_ref, float(n * ho1 * wo1))

    # ---- stage 2: ConvT(16->16, k3, s1, p1) + BN + ReLU ----------------------------
    # Height padding folded into block-diagonal 0/1 shift matrices e2[a]; width padding
    # folded into the w2 band.  No VMEM scratch: act1 stays in vregs.
    y2 = None
    for a in range(3):
        p = jnp.dot(act1.astype(md), w2_ref[a].astype(md),
                    preferred_element_type=f32)                            # (n*ho1, wo1*c)
        part = jnp.dot(e2_ref[a], p, preferred_element_type=f32)
        y2 = part if y2 is None else y2 + part
    act2 = bn_relu(y2, g2_ref, be2_ref, float(n * ho1 * wo1))

    # ---- stage 3: ConvT(16->1, k2, s2) + BN(1ch) + ReLU ----------------------------
    # Stride-2 zero insertion folded into the w3 band (columns) and batch-block-diagonal
    # row-interleave matrices e3[a] (rows): the whole (n*ho3, wo3) output is built in one
    # accumulator and written with a single aligned full-block store.
    y3 = None
    for a in range(2):
        p = jnp.dot(act2.astype(md), w3_ref[a].astype(md),
                    preferred_element_type=f32)                            # (n*ho1, wo3)
        part = jnp.dot(e3_ref[a], p, preferred_element_type=f32)           # (n*ho3, wo3)
        y3 = part if y3 is None else y3 + part

    cnt3 = float(n * ho3 * wo3)
    tot = jnp.sum(jnp.sum(y3, axis=1, keepdims=True), axis=0, keepdims=True)      # (1,1)
    totsq = jnp.sum(jnp.sum(y3 * y3, axis=1, keepdims=True), axis=0, keepdims=True)
    mean3 = tot / cnt3
    var3 = totsq / cnt3 - mean3 * mean3
    scale3 = g3_ref[...] * lax.rsqrt(var3 + eps)                           # (1, 1)
    shift3 = be3_ref[...] - mean3 * scale3
    o_ref[...] = jnp.maximum(y3 * scale3 + shift3, 0.0)


def _fused_decoder_call(a1s, consts, *, n, ho1, wo1, ho3, wo3):
    inputs = (a1s, consts['w1'], consts['w2'], consts['e2'], consts['w3'], consts['e3'],
              consts['s'], consts['st'], consts['g1'], consts['be1'],
              consts['g2'], consts['be2'], consts['g3'], consts['be3'])

    def full_block(arr):
        nd = arr.ndim
        return pl.BlockSpec(arr.shape, lambda i, _nd=nd: (0,) * _nd)

    kernel = functools.partial(_fused_decoder_kernel, n=n, ho1=ho1, wo1=wo1,
                               ho3=ho3, wo3=wo3, eps=EPS)
    return pl.pallas_call(
        kernel,
        # wo3 = 28 < 128 lanes keeps the final store lane-masked; padding the output (and
        # the w3 band) to 128 lanes would un-mask it but adds more weight-DMA bytes than
        # it saves on this 6 KiB output, so we keep the narrow output.
        out_shape=jax.ShapeDtypeStruct((n * ho3, wo3), jnp.float32),
        grid=(1,),
        in_specs=[full_block(x) for x in inputs],
        out_specs=pl.BlockSpec((n * ho3, wo3), lambda i: (0, 0)),
        # Single grid step: one fully VMEM-resident pass.  A v7x core-parallel split at
        # n=2 would cost a cross-core BN reduction for no gain; revisit at larger batch.
        # TODO(synk): with grid=(1,) the second pipeline buffer for the weight bands is
        # dead; pl.Buffered(1) single-buffering would reclaim it (pure hygiene at ~2 MiB).
        compiler_params=pltpu.CompilerParams(dimension_semantics=("arbitrary",)),
    )(*inputs)


# ------------------------------ host-side constant prep -----------------------------
def _flipped_taps(w_pt):
    """PyTorch ConvTranspose2d weight (Cin, Cout, kh, kw) -> spatially flipped VALID-conv
    taps Wc[a, b, cin, cout]."""
    w = np.asarray(w_pt, np.float32)
    return np.transpose(w[:, :, ::-1, ::-1], (2, 3, 0, 1))


def _band(wc, w_in, w_out, dil, off):
    """Per-height-tap banded (block-Toeplitz) matrices mapping a (w, cin) column axis to
    (j, cout):  Wmat[a][(w,ci),(j,co)] = Wc[a,b,ci,co] where b solves dil*w + off == j+b
    (input dilation `dil` and pad-before `off` are folded into the band)."""
    kh, kw, cin, cout = wc.shape
    w = np.arange(w_in)[:, None, None]
    j = np.arange(w_out)[None, :, None]
    b = np.arange(kw)[None, None, :]
    sel = (dil * w + off == j + b).astype(np.float32)          # (w_in, w_out, kw)
    m = np.einsum('wjb,abio->awijo', sel, wc)
    return m.reshape(kh, w_in * cin, w_out * cout)


def _row_shift(h_in, h_out, dil, off, kh, n):
    """Batch-block-diagonal 0/1 row matrices: E[a][(b,i),(b,p)] = 1 iff i == dil*p+off-a."""
    a = np.arange(kh)[:, None, None]
    i = np.arange(h_out)[None, :, None]
    p = np.arange(h_in)[None, None, :]
    e = (i == dil * p + off - a).astype(np.float32)            # (kh, h_out, h_in)
    eye = np.eye(n, dtype=np.float32)
    return np.stack([np.kron(eye, e[k]) for k in range(kh)])   # (kh, n*h_out, n*h_in)


def build_decoder_constants(params, x_shape):
    """All weight-derived kernel operands, built ONCE on the host (numpy) and cached as
    device arrays: banded weights, row shift/interleave matrices, channel-select
    matrices, BN affine.  Static across calls -> no per-call XLA rebuild of ~1 MiB."""
    n, c, h, w = x_shape
    ho1, wo1 = 2 * h - 2, 2 * w - 2
    ho3, wo3 = 2 * ho1, 2 * wo1

    wc1 = _flipped_taps(params['w1'])                          # (3, 3, c, c)
    wc2 = _flipped_taps(params['w2'])                          # (3, 3, c, c)
    wc3 = _flipped_taps(params['w3'])                          # (2, 2, c, 1)

    # stage 1: only the even (non-dilated) input columns are kept -> dil=2, off=0;
    # taps concatenated along rows (K) to match the tap-stacked slab.
    w1s = _band(wc1, w, wo1, dil=2, off=0).reshape(3 * w * c, wo1 * c)   # (384, 224)
    # stage 2: width pad of 1 folded into the band.
    w2m = _band(wc2, wo1, wo1, dil=1, off=1)                   # (3, 224, 224)
    # stage 3: stride-2 column zero-insertion + pad folded into the band.
    w3m = _band(wc3, wo1, wo3, dil=2, off=1)                   # (2, 224, 28)

    e2 = _row_shift(ho1, ho1, dil=1, off=1, kh=3, n=n)         # (3, n*ho1, n*ho1)
    e3 = _row_shift(ho1, ho3, dil=2, off=1, kh=2, n=n)         # (2, n*ho3, n*ho1)

    smat = np.tile(np.eye(c, dtype=np.float32), (wo1, 1))      # (wo1*c, c)

    md, f32 = MATMUL_DTYPE, jnp.float32
    # NOTE: conv biases b1/b2/b3 are intentionally dropped: a per-channel constant shift
    # is exactly cancelled by train-mode BatchNorm's mean subtraction (the reference
    # below keeps them, which validates this).
    return dict(
        w1=jnp.asarray(w1s, md), w2=jnp.asarray(w2m, md), w3=jnp.asarray(w3m, md),
        e2=jnp.asarray(e2, f32), e3=jnp.asarray(e3, f32),
        s=jnp.asarray(smat, f32), st=jnp.asarray(smat.T, f32),
        g1=jnp.asarray(np.asarray(params['g1']).reshape(1, c), f32),
        be1=jnp.asarray(np.asarray(params['be1']).reshape(1, c), f32),
        g2=jnp.asarray(np.asarray(params['g2']).reshape(1, c), f32),
        be2=jnp.asarray(np.asarray(params['be2']).reshape(1, c), f32),
        g3=jnp.asarray(np.asarray(params['g3']).reshape(1, 1), f32),
        be3=jnp.asarray(np.asarray(params['be3']).reshape(1, 1), f32),
    )


@jax.jit
def decoder_forward(x_nchw, consts):
    n, c, h, w = x_nchw.shape
    ho1, wo1 = 2 * h - 2, 2 * w - 2
    ho3, wo3 = 2 * ho1, 2 * wo1

    # Stage-1 slab: NCHW -> NHWC, height zero-dilation (stride 2) + one pad row below,
    # and the kh=3 height taps concatenated along the column (K) axis.  The stride-2
    # width zeros / width pad column are never materialised (folded into the w1 band).
    xh = jnp.transpose(x_nchw, (0, 2, 3, 1))                       # (n, h, w, c)
    xd = jnp.zeros((n, 2 * h - 1, w, c), xh.dtype).at[:, ::2].set(xh)
    xd = jnp.pad(xd, ((0, 0), (0, 1), (0, 0), (0, 0)))             # (n, 2h, w, c)
    slabs = [xd[:, a:a + ho1].reshape(n, ho1, w * c) for a in range(3)]
    a1s = jnp.concatenate(slabs, axis=-1).reshape(n * ho1, 3 * w * c)
    a1s = a1s.astype(MATMUL_DTYPE)                                 # (n*ho1, 3*w*c)

    out = _fused_decoder_call(a1s, consts, n=n, ho1=ho1, wo1=wo1, ho3=ho3, wo3=wo3)
    return out.reshape(n, ho3, wo3)[:, None, :, :]                 # (N, 1, H, W)


# ------------------------------ pure-JAX reference ----------------------------------
def _conv_transpose_ref(x_nchw, w_pt, bias, stride, padding, out_pad):
    cin, cout, kh, kw = w_pt.shape
    w_conv = jnp.transpose(w_pt[:, :, ::-1, ::-1], (1, 0, 2, 3))   # (Cout, Cin, kh, kw)
    pb = kh - 1 - padding
    pa = kh - 1 - padding + out_pad
    y = lax.conv_general_dilated(
        x_nchw, w_conv, window_strides=(1, 1),
        padding=[(pb, pa), (pb, pa)], lhs_dilation=(stride, stride),
        dimension_numbers=("NCHW", "OIHW", "NCHW"))
    return y + bias.reshape(1, cout, 1, 1)


def _bn_relu_ref(y, gamma, beta, eps=EPS):
    mean = jnp.mean(y, axis=(0, 2, 3), keepdims=True)
    var = jnp.mean(jnp.square(y - mean), axis=(0, 2, 3), keepdims=True)
    yhat = (y - mean) * lax.rsqrt(var + eps)
    return jnp.maximum(yhat * gamma.reshape(1, -1, 1, 1) + beta.reshape(1, -1, 1, 1), 0.0)


def decoder_ref(x, p):
    y = _bn_relu_ref(_conv_transpose_ref(x, p["w1"], p["b1"], 2, 2, 1), p["g1"], p["be1"])
    y = _bn_relu_ref(_conv_transpose_ref(y, p["w2"], p["b2"], 1, 1, 0), p["g2"], p["be2"])
    y = _bn_relu_ref(_conv_transpose_ref(y, p["w3"], p["b3"], 2, 0, 0), p["g3"], p["be3"])
    return y


# ----------------------------------- main --------------------------------------------
if __name__ == "__main__":
    key = jax.random.PRNGKey(0)
    ks = jax.random.split(key, 8)

    params = {
        # ConvTranspose2d weights: (C_in, C_out, kH, kW), PyTorch layout
        "w1": jax.random.normal(ks[0], (16, 16, 3, 3), jnp.float32) * 0.1,
        "b1": jax.random.normal(ks[1], (16,), jnp.float32) * 0.1,
        "w2": jax.random.normal(ks[2], (16, 16, 3, 3), jnp.float32) * 0.1,
        "b2": jax.random.normal(ks[3], (16,), jnp.float32) * 0.1,
        "w3": jax.random.normal(ks[4], (16, 1, 2, 2), jnp.float32) * 0.1,
        "b3": jax.random.normal(ks[5], (1,), jnp.float32) * 0.1,
        # BatchNorm2d fresh-module defaults: gamma=1, beta=0 (training mode -> batch stats)
        "g1": jnp.ones((16,), jnp.float32), "be1": jnp.zeros((16,), jnp.float32),
        "g2": jnp.ones((16,), jnp.float32), "be2": jnp.zeros((16,), jnp.float32),
        "g3": jnp.ones((1,), jnp.float32), "be3": jnp.zeros((1,), jnp.float32),
    }

    # input: (N=2, C=16, H=8, W=8) -> output (2, 1, 28, 28)
    x = jax.random.normal(ks[6], (2, 16, 8, 8), jnp.float32)

    consts = build_decoder_constants(params, x.shape)   # host-side, built once
    out = jax.block_until_ready(decoder_forward(x, consts))
    assert out.shape == (2, 1, 28, 28), out.shape

    ref = jax.block_until_ready(decoder_ref(x, params))
    tol = 2e-3 if MATMUL_DTYPE == jnp.float32 else 3e-2
    assert jnp.allclose(out, ref, atol=tol, rtol=tol), float(jnp.max(jnp.abs(out - ref)))

    print("KERNEL_OK")
</pallas_src>

<mosaic_0001>
module attributes {stable_mosaic.version = 11 : i64} {
  func.func @_fused_decoder_kernel(%arg0: i32, %arg1: memref<28x384xf32, #tpu.memory_space<vmem>>, %arg2: memref<384x224xf32, #tpu.memory_space<vmem>>, %arg3: memref<3x224x224xf32, #tpu.memory_space<vmem>>, %arg4: memref<3x28x28xf32, #tpu.memory_space<vmem>>, %arg5: memref<2x224x28xf32, #tpu.memory_space<vmem>>, %arg6: memref<2x56x28xf32, #tpu.memory_space<vmem>>, %arg7: memref<224x16xf32, #tpu.memory_space<vmem>>, %arg8: memref<16x224xf32, #tpu.memory_space<vmem>>, %arg9: memref<1x16xf32, #tpu.memory_space<vmem>>, %arg10: memref<1x16xf32, #tpu.memory_space<vmem>>, %arg11: memref<1x16xf32, #tpu.memory_space<vmem>>, %arg12: memref<1x16xf32, #tpu.memory_space<vmem>>, %arg13: memref<1x1xf32, #tpu.memory_space<vmem>>, %arg14: memref<1x1xf32, #tpu.memory_space<vmem>>, %arg15: memref<56x28xf32, #tpu.memory_space<vmem>>) attributes {dimension_semantics = [#tpu.dimension_semantics<arbitrary>], iteration_bounds = array<i64: 1>, scalar_prefetch = 0 : i64, scratch_operands = 0 : i64, tpu.core_type = #tpu.core_type<tc>, window_params = [{pipeline_mode = #tpu.pipeline_mode<synchronous>, transform_indices = @transform_0, window_bounds = array<i64: 28, 384>}, {pipeline_mode = #tpu.pipeline_mode<synchronous>, transform_indices = @transform_1, window_bounds = array<i64: 384, 224>}, {pipeline_mode = #tpu.pipeline_mode<synchronous>, transform_indices = @transform_2, window_bounds = array<i64: 3, 224, 224>}, {pipeline_mode = #tpu.pipeline_mode<synchronous>, transform_indices = @transform_3, window_bounds = array<i64: 3, 28, 28>}, {pipeline_mode = #tpu.pipeline_mode<synchronous>, transform_indices = @transform_4, window_bounds = array<i64: 2, 224, 28>}, {pipeline_mode = #tpu.pipeline_mode<synchronous>, transform_indices = @transform_5, window_bounds = array<i64: 2, 56, 28>}, {pipeline_mode = #tpu.pipeline_mode<synchronous>, transform_indices = @transform_6, window_bounds = array<i64: 224, 16>}, {pipeline_mode = #tpu.pipeline_mode<synchronous>, transform_indices = @transform_7, window_bounds = array<i64: 16, 224>}, {pipeline_mode = #tpu.pipeline_mode<synchronous>, transform_indices = @transform_8, window_bounds = array<i64: 1, 16>}, {pipeline_mode = #tpu.pipeline_mode<synchronous>, transform_indices = @transform_9, window_bounds = array<i64: 1, 16>}, {pipeline_mode = #tpu.pipeline_mode<synchronous>, transform_indices = @transform_10, window_bounds = array<i64: 1, 16>}, {pipeline_mode = #tpu.pipeline_mode<synchronous>, transform_indices = @transform_11, window_bounds = array<i64: 1, 16>}, {pipeline_mode = #tpu.pipeline_mode<synchronous>, transform_indices = @transform_12, window_bounds = array<i64: 1, 1>}, {pipeline_mode = #tpu.pipeline_mode<synchronous>, transform_indices = @transform_13, window_bounds = array<i64: 1, 1>}, {pipeline_mode = #tpu.pipeline_mode<synchronous>, transform_indices = @transform_14, window_bounds = array<i64: 56, 28>}]} {
    %c0 = arith.constant 0 : index
    %c0_0 = arith.constant 0 : index
    %0 = vector.load %arg1[%c0, %c0_0] : memref<28x384xf32, #tpu.memory_space<vmem>>, vector<28x384xf32>
    %c0_1 = arith.constant 0 : index
    %c0_2 = arith.constant 0 : index
    %1 = vector.load %arg2[%c0_1, %c0_2] : memref<384x224xf32, #tpu.memory_space<vmem>>, vector<384x224xf32>
    %cst = arith.constant dense<0.000000e+00> : vector<28x224xf32>
    %2 = tpu.matmul %0, %1, %cst {dimension_numbers = #tpu.dot_dimension_numbers<[1], [0], [0], [1], [0, 0, 1, 1], [], []>} : vector<28x384xf32>, vector<384x224xf32>, vector<28x224xf32> -> vector<28x224xf32>
    %cst_3 = arith.constant dense<0.000000e+00> : vector<224xf32>
    %3 = vector.multi_reduction <add>, %2, %cst_3 [0] : vector<28x224xf32> to vector<224xf32>
    %4 = vector.shape_cast %3 : vector<224xf32> to vector<1x224xf32>
    %5 = arith.mulf %2, %2 : vector<28x224xf32>
    %cst_4 = arith.constant dense<0.000000e+00> : vector<224xf32>
    %6 = vector.multi_reduction <add>, %5, %cst_4 [0] : vector<28x224xf32> to vector<224xf32>
    %7 = vector.shape_cast %6 : vector<224xf32> to vector<1x224xf32>
    %8 = tpu.concatenate %4, %7 in 0 : vector<1x224xf32>, vector<1x224xf32> -> vector<2x224xf32>
    %c0_5 = arith.constant 0 : index
    %c0_6 = arith.constant 0 : index
    %9 = vector.load %arg7[%c0_5, %c0_6] : memref<224x16xf32, #tpu.memory_space<vmem>>, vector<224x16xf32>
    %cst_7 = arith.constant dense<0.000000e+00> : vector<2x16xf32>
    %10 = tpu.matmul %8, %9, %cst_7 {dimension_numbers = #tpu.dot_dimension_numbers<[1], [0], [0], [1], [0, 0, 1, 1], [], []>} : vector<2x224xf32>, vector<224x16xf32>, vector<2x16xf32> -> vector<2x16xf32>
    %11 = vector.extract_strided_slice %10 {offsets = [0, 0], sizes = [1, 16], strides = [1, 1]} : vector<2x16xf32> to vector<1x16xf32>
    %cst_8 = arith.constant 0.00255102036 : f32
    %12 = vector.broadcast %cst_8 : f32 to vector<1x16xf32>
    %13 = arith.mulf %11, %12 : vector<1x16xf32>
    %14 = vector.extract_strided_slice %10 {offsets = [1, 0], sizes = [1, 16], strides = [1, 1]} : vector<2x16xf32> to vector<1x16xf32>
    %cst_9 = arith.constant 0.00255102036 : f32
    %15 = vector.broadcast %cst_9 : f32 to vector<1x16xf32>
    %16 = arith.mulf %14, %15 : vector<1x16xf32>
    %17 = arith.mulf %13, %13 : vector<1x16xf32>
    %18 = arith.subf %16, %17 : vector<1x16xf32>
    %c0_10 = arith.constant 0 : index
    %c0_11 = arith.constant 0 : index
    %19 = vector.load %arg9[%c0_10, %c0_11] : memref<1x16xf32, #tpu.memory_space<vmem>>, vector<1x16xf32>
    %cst_12 = arith.constant 9.99999974E-6 : f32
    %20 = vector.broadcast %cst_12 : f32 to vector<1x16xf32>
    %21 = arith.addf %18, %20 : vector<1x16xf32>
    %22 = math.rsqrt %21 : vector<1x16xf32>
    %23 = arith.mulf %19, %22 : vector<1x16xf32>
    %c0_13 = arith.constant 0 : index
    %c0_14 = arith.constant 0 : index
    %24 = vector.load %arg10[%c0_13, %c0_14] : memref<1x16xf32, #tpu.memory_space<vmem>>, vector<1x16xf32>
    %25 = arith.mulf %13, %23 : vector<1x16xf32>
    %26 = arith.subf %24, %25 : vector<1x16xf32>
    %27 = tpu.concatenate %23, %26 in 0 : vector<1x16xf32>, vector<1x16xf32> -> vector<2x16xf32>
    %c0_15 = arith.constant 0 : index
    %c0_16 = arith.constant 0 : index
    %28 = vector.load %arg8[%c0_15, %c0_16] : memref<16x224xf32, #tpu.memory_space<vmem>>, vector<16x224xf32>
    %cst_17 = arith.constant dense<0.000000e+00> : vector<2x224xf32>
    %29 = tpu.matmul %27, %28, %cst_17 {dimension_numbers = #tpu.dot_dimension_numbers<[1], [0], [0], [1], [0, 0, 1, 1], [], []>} : vector<2x16xf32>, vector<16x224xf32>, vector<2x224xf32> -> vector<2x224xf32>
    %30 = vector.extract_strided_slice %29 {offsets = [0, 0], sizes = [1, 224], strides = [1, 1]} : vector<2x224xf32> to vector<1x224xf32>
    %31 = vector.broadcast %30 : vector<1x224xf32> to vector<28x224xf32>
    %32 = arith.mulf %2, %31 : vector<28x224xf32>
    %33 = vector.extract_strided_slice %29 {offsets = [1, 0], sizes = [1, 224], strides = [1, 1]} : vector<2x224xf32> to vector<1x224xf32>
    %34 = vector.broadcast %33 : vector<1x224xf32> to vector<28x224xf32>
    %35 = arith.addf %32, %34 : vector<28x224xf32>
    %cst_18 = arith.constant 0.000000e+00 : f32
    %36 = vector.broadcast %cst_18 : f32 to vector<28x224xf32>
    %37 = arith.maximumf %35, %36 : vector<28x224xf32>
    %c0_19 = arith.constant 0 : index
    %c0_20 = arith.constant 0 : index
    %c0_21 = arith.constant 0 : index
    %38 = vector.load %arg3[%c0_19, %c0_20, %c0_21] : memref<3x224x224xf32, #tpu.memory_space<vmem>>, vector<1x224x224xf32>
    %39 = vector.shape_cast %38 : vector<1x224x224xf32> to vector<224x224xf32>
    %cst_22 = arith.constant dense<0.000000e+00> : vector<28x224xf32>
    %40 = tpu.matmul %37, %39, %cst_22 {dimension_numbers = #tpu.dot_dimension_numbers<[1], [0], [0], [1], [0, 0, 1, 1], [], []>} : vector<28x224xf32>, vector<224x224xf32>, vector<28x224xf32> -> vector<28x224xf32>
    %c0_23 = arith.constant 0 : index
    %c0_24 = arith.constant 0 : index
    %c0_25 = arith.constant 0 : index
    %41 = vector.load %arg4[%c0_23, %c0_24, %c0_25] : memref<3x28x28xf32, #tpu.memory_space<vmem>>, vector<1x28x28xf32>
    %42 = vector.shape_cast %41 : vector<1x28x28xf32> to vector<28x28xf32>
    %cst_26 = arith.constant dense<0.000000e+00> : vector<28x224xf32>
    %43 = tpu.matmul %42, %40, %cst_26 {dimension_numbers = #tpu.dot_dimension_numbers<[1], [0], [0], [1], [0, 0, 1, 1], [], []>} : vector<28x28xf32>, vector<28x224xf32>, vector<28x224xf32> -> vector<28x224xf32>
    %c1 = arith.constant 1 : index
    %c0_27 = arith.constant 0 : index
    %c0_28 = arith.constant 0 : index
    %44 = vector.load %arg3[%c1, %c0_27, %c0_28] : memref<3x224x224xf32, #tpu.memory_space<vmem>>, vector<1x224x224xf32>
    %45 = vector.shape_cast %44 : vector<1x224x224xf32> to vector<224x224xf32>
    %cst_29 = arith.constant dense<0.000000e+00> : vector<28x224xf32>
    %46 = tpu.matmul %37, %45, %cst_29 {dimension_numbers = #tpu.dot_dimension_numbers<[1], [0], [0], [1], [0, 0, 1, 1], [], []>} : vector<28x224xf32>, vector<224x224xf32>, vector<28x224xf32> -> vector<28x224xf32>
    %c1_30 = arith.constant 1 : index
    %c0_31 = arith.constant 0 : index
    %c0_32 = arith.constant 0 : index
    %47 = vector.load %arg4[%c1_30, %c0_31, %c0_32] : memref<3x28x28xf32, #tpu.memory_space<vmem>>, vector<1x28x28xf32>
    %48 = vector.shape_cast %47 : vector<1x28x28xf32> to vector<28x28xf32>
    %cst_33 = arith.constant dense<0.000000e+00> : vector<28x224xf32>
    %49 = tpu.matmul %48, %46, %cst_33 {dimension_numbers = #tpu.dot_dimension_numbers<[1], [0], [0], [1], [0, 0, 1, 1], [], []>} : vector<28x28xf32>, vector<28x224xf32>, vector<28x224xf32> -> vector<28x224xf32>
    %50 = arith.addf %43, %49 : vector<28x224xf32>
    %c2 = arith.constant 2 : index
    %c0_34 = arith.constant 0 : index
    %c0_35 = arith.constant 0 : index
    %51 = vector.load %arg3[%c2, %c0_34, %c0_35] : memref<3x224x224xf32, #tpu.memory_space<vmem>>, vector<1x224x224xf32>
    %52 = vector.shape_cast %51 : vector<1x224x224xf32> to vector<224x224xf32>
    %cst_36 = arith.constant dense<0.000000e+00> : vector<28x224xf32>
    %53 = tpu.matmul %37, %52, %cst_36 {dimension_numbers = #tpu.dot_dimension_numbers<[1], [0], [0], [1], [0, 0, 1, 1], [], []>} : vector<28x224xf32>, vector<224x224xf32>, vector<28x224xf32> -> vector<28x224xf32>
    %c2_37 = arith.constant 2 : index
    %c0_38 = arith.constant 0 : index
    %c0_39 = arith.constant 0 : index
    %54 = vector.load %arg4[%c2_37, %c0_38, %c0_39] : memref<3x28x28xf32, #tpu.memory_space<vmem>>, vector<1x28x28xf32>
    %55 = vector.shape_cast %54 : vector<1x28x28xf32> to vector<28x28xf32>
    %cst_40 = arith.constant dense<0.000000e+00> : vector<28x224xf32>
    %56 = tpu.matmul %55, %53, %cst_40 {dimension_numbers = #tpu.dot_dimension_numbers<[1], [0], [0], [1], [0, 0, 1, 1], [], []>} : vector<28x28xf32>, vector<28x224xf32>, vector<28x224xf32> -> vector<28x224xf32>
    %57 = arith.addf %50, %56 : vector<28x224xf32>
    %cst_41 = arith.constant dense<0.000000e+00> : vector<224xf32>
    %58 = vector.multi_reduction <add>, %57, %cst_41 [0] : vector<28x224xf32> to vector<224xf32>
    %59 = vector.shape_cast %58 : vector<224xf32> to vector<1x224xf32>
    %60 = arith.mulf %57, %57 : vector<28x224xf32>
    %cst_42 = arith.constant dense<0.000000e+00> : vector<224xf32>
    %61 = vector.multi_reduction <add>, %60, %cst_42 [0] : vector<28x224xf32> to vector<224xf32>
    %62 = vector.shape_cast %61 : vector<224xf32> to vector<1x224xf32>
    %63 = tpu.concatenate %59, %62 in 0 : vector<1x224xf32>, vector<1x224xf32> -> vector<2x224xf32>
    %c0_43 = arith.constant 0 : index
    %c0_44 = arith.constant 0 : index
    %64 = vector.load %arg7[%c0_43, %c0_44] : memref<224x16xf32, #tpu.memory_space<vmem>>, vector<224x16xf32>
    %cst_45 = arith.constant dense<0.000000e+00> : vector<2x16xf32>
    %65 = tpu.matmul %63, %64, %cst_45 {dimension_numbers = #tpu.dot_dimension_numbers<[1], [0], [0], [1], [0, 0, 1, 1], [], []>} : vector<2x224xf32>, vector<224x16xf32>, vector<2x16xf32> -> vector<2x16xf32>
    %66 = vector.extract_strided_slice %65 {offsets = [0, 0], sizes = [1, 16], strides = [1, 1]} : vector<2x16xf32> to vector<1x16xf32>
    %cst_46 = arith.constant 0.00255102036 : f32
    %67 = vector.broadcast %cst_46 : f32 to vector<1x16xf32>
    %68 = arith.mulf %66, %67 : vector<1x16xf32>
    %69 = vector.extract_strided_slice %65 {offsets = [1, 0], sizes = [1, 16], strides = [1, 1]} : vector<2x16xf32> to vector<1x16xf32>
    %cst_47 = arith.constant 0.00255102036 : f32
    %70 = vector.broadcast %cst_47 : f32 to vector<1x16xf32>
    %71 = arith.mulf %69, %70 : vector<1x16xf32>
    %72 = arith.mulf %68, %68 : vector<1x16xf32>
    %73 = arith.subf %71, %72 : vector<1x16xf32>
    %c0_48 = arith.constant 0 : index
    %c0_49 = arith.constant 0 : index
    %74 = vector.load %arg11[%c0_48, %c0_49] : memref<1x16xf32, #tpu.memory_space<vmem>>, vector<1x16xf32>
    %cst_50 = arith.constant 9.99999974E-6 : f32
    %75 = vector.broadcast %cst_50 : f32 to vector<1x16xf32>
    %76 = arith.addf %73, %75 : vector<1x16xf32>
    %77 = math.rsqrt %76 : vector<1x16xf32>
    %78 = arith.mulf %74, %77 : vector<1x16xf32>
    %c0_51 = arith.constant 0 : index
    %c0_52 = arith.constant 0 : index
    %79 = vector.load %arg12[%c0_51, %c0_52] : memref<1x16xf32, #tpu.memory_space<vmem>>, vector<1x16xf32>
    %80 = arith.mulf %68, %78 : vector<1x16xf32>
    %81 = arith.subf %79, %80 : vector<1x16xf32>
    %82 = tpu.concatenate %78, %81 in 0 : vector<1x16xf32>, vector<1x16xf32> -> vector<2x16xf32>
    %c0_53 = arith.constant 0 : index
    %c0_54 = arith.constant 0 : index
    %83 = vector.load %arg8[%c0_53, %c0_54] : memref<16x224xf32, #tpu.memory_space<vmem>>, vector<16x224xf32>
    %cst_55 = arith.constant dense<0.000000e+00> : vector<2x224xf32>
    %84 = tpu.matmul %82, %83, %cst_55 {dimension_numbers = #tpu.dot_dimension_numbers<[1], [0], [0], [1], [0, 0, 1, 1], [], []>} : vector<2x16xf32>, vector<16x224xf32>, vector<2x224xf32> -> vector<2x224xf32>
    %85 = vector.extract_strided_slice %84 {offsets = [0, 0], sizes = [1, 224], strides = [1, 1]} : vector<2x224xf32> to vector<1x224xf32>
    %86 = vector.broadcast %85 : vector<1x224xf32> to vector<28x224xf32>
    %87 = arith.mulf %57, %86 : vector<28x224xf32>
    %88 = vector.extract_strided_slice %84 {offsets = [1, 0], sizes = [1, 224], strides = [1, 1]} : vector<2x224xf32> to vector<1x224xf32>
    %89 = vector.broadcast %88 : vector<1x224xf32> to vector<28x224xf32>
    %90 = arith.addf %87, %89 : vector<28x224xf32>
    %cst_56 = arith.constant 0.000000e+00 : f32
    %91 = vector.broadcast %cst_56 : f32 to vector<28x224xf32>
    %92 = arith.maximumf %90, %91 : vector<28x224xf32>
    %c0_57 = arith.constant 0 : index
    %c0_58 = arith.constant 0 : index
    %c0_59 = arith.constant 0 : index
    %93 = vector.load %arg5[%c0_57, %c0_58, %c0_59] : memref<2x224x28xf32, #tpu.memory_space<vmem>>, vector<1x224x28xf32>
    %94 = vector.shape_cast %93 : vector<1x224x28xf32> to vector<224x28xf32>
    %cst_60 = arith.constant dense<0.000000e+00> : vector<28x28xf32>
    %95 = tpu.matmul %92, %94, %cst_60 {dimension_numbers = #tpu.dot_dimension_numbers<[1], [0], [0], [1], [0, 0, 1, 1], [], []>} : vector<28x224xf32>, vector<224x28xf32>, vector<28x28xf32> -> vector<28x28xf32>
    %c0_61 = arith.constant 0 : index
    %c0_62 = arith.constant 0 : index
    %c0_63 = arith.constant 0 : index
    %96 = vector.load %arg6[%c0_61, %c0_62, %c0_63] : memref<2x56x28xf32, #tpu.memory_space<vmem>>, vector<1x56x28xf32>
    %97 = vector.shape_cast %96 : vector<1x56x28xf32> to vector<56x28xf32>
    %cst_64 = arith.constant dense<0.000000e+00> : vector<56x28xf32>
    %98 = tpu.matmul %97, %95, %cst_64 {dimension_numbers = #tpu.dot_dimension_numbers<[1], [0], [0], [1], [0, 0, 1, 1], [], []>} : vector<56x28xf32>, vector<28x28xf32>, vector<56x28xf32> -> vector<56x28xf32>
    %c1_65 = arith.constant 1 : index
    %c0_66 = arith.constant 0 : index
    %c0_67 = arith.constant 0 : index
    %99 = vector.load %arg5[%c1_65, %c0_66, %c0_67] : memref<2x224x28xf32, #tpu.memory_space<vmem>>, vector<1x224x28xf32>
    %100 = vector.shape_cast %99 : vector<1x224x28xf32> to vector<224x28xf32>
    %cst_68 = arith.constant dense<0.000000e+00> : vector<28x28xf32>
    %101 = tpu.matmul %92, %100, %cst_68 {dimension_numbers = #tpu.dot_dimension_numbers<[1], [0], [0], [1], [0, 0, 1, 1], [], []>} : vector<28x224xf32>, vector<224x28xf32>, vector<28x28xf32> -> vector<28x28xf32>
    %c1_69 = arith.constant 1 : index
    %c0_70 = arith.constant 0 : index
    %c0_71 = arith.constant 0 : index
    %102 = vector.load %arg6[%c1_69, %c0_70, %c0_71] : memref<2x56x28xf32, #tpu.memory_space<vmem>>, vector<1x56x28xf32>
    %103 = vector.shape_cast %102 : vector<1x56x28xf32> to vector<56x28xf32>
    %cst_72 = arith.constant dense<0.000000e+00> : vector<56x28xf32>
    %104 = tpu.matmul %103, %101, %cst_72 {dimension_numbers = #tpu.dot_dimension_numbers<[1], [0], [0], [1], [0, 0, 1, 1], [], []>} : vector<56x28xf32>, vector<28x28xf32>, vector<56x28xf32> -> vector<56x28xf32>
    %105 = arith.addf %98, %104 : vector<56x28xf32>
    %cst_73 = arith.constant dense<0.000000e+00> : vector<56xf32>
    %106 = vector.multi_reduction <add>, %105, %cst_73 [1] : vector<56x28xf32> to vector<56xf32>
    %107 = vector.shape_cast %106 : vector<56xf32> to vector<56x1xf32>
    %cst_74 = arith.constant dense<0.000000e+00> : vector<1xf32>
    %108 = vector.multi_reduction <add>, %107, %cst_74 [0] : vector<56x1xf32> to vector<1xf32>
    %109 = vector.shape_cast %108 : vector<1xf32> to vector<1x1xf32>
    %110 = arith.mulf %105, %105 : vector<56x28xf32>
    %cst_75 = arith.constant dense<0.000000e+00> : vector<56xf32>
    %111 = vector.multi_reduction <add>, %110, %cst_75 [1] : vector<56x28xf32> to vector<56xf32>
    %112 = vector.shape_cast %111 : vector<56xf32> to vector<56x1xf32>
    %cst_76 = arith.constant dense<0.000000e+00> : vector<1xf32>
    %113 = vector.multi_reduction <add>, %112, %cst_76 [0] : vector<56x1xf32> to vector<1xf32>
    %114 = vector.shape_cast %113 : vector<1xf32> to vector<1x1xf32>
    %cst_77 = arith.constant 1.568000e+03 : f32
    %115 = vector.broadcast %cst_77 : f32 to vector<1x1xf32>
    %116 = arith.divf %109, %115 : vector<1x1xf32>
    %cst_78 = arith.constant 1.568000e+03 : f32
    %117 = vector.broadcast %cst_78 : f32 to vector<1x1xf32>
    %118 = arith.divf %114, %117 : vector<1x1xf32>
    %119 = arith.mulf %116, %116 : vector<1x1xf32>
    %120 = arith.subf %118, %119 : vector<1x1xf32>
    %c0_79 = arith.constant 0 : index
    %c0_80 = arith.constant 0 : index
    %121 = vector.load %arg13[%c0_79, %c0_80] : memref<1x1xf32, #tpu.memory_space<vmem>>, vector<1x1xf32>
    %cst_81 = arith.constant 9.99999974E-6 : f32
    %122 = vector.broadcast %cst_81 : f32 to vector<1x1xf32>
    %123 = arith.addf %120, %122 : vector<1x1xf32>
    %124 = math.rsqrt %123 : vector<1x1xf32>
    %125 = arith.mulf %121, %124 : vector<1x1xf32>
    %c0_82 = arith.constant 0 : index
    %c0_83 = arith.constant 0 : index
    %126 = vector.load %arg14[%c0_82, %c0_83] : memref<1x1xf32, #tpu.memory_space<vmem>>, vector<1x1xf32>
    %127 = arith.mulf %116, %125 : vector<1x1xf32>
    %128 = arith.subf %126, %127 : vector<1x1xf32>
    %129 = vector.broadcast %125 : vector<1x1xf32> to vector<56x28xf32>
    %130 = arith.mulf %105, %129 : vector<56x28xf32>
    %131 = vector.broadcast %128 : vector<1x1xf32> to vector<56x28xf32>
    %132 = arith.addf %130, %131 : vector<56x28xf32>
    %cst_84 = arith.constant 0.000000e+00 : f32
    %133 = vector.broadcast %cst_84 : f32 to vector<56x28xf32>
    %134 = arith.maximumf %132, %133 : vector<56x28xf32>
    %c0_85 = arith.constant 0 : index
    %c0_86 = arith.constant 0 : index
    %135 = vector.load %arg15[%c0_85, %c0_86] : memref<56x28xf32, #tpu.memory_space<vmem>>, vector<56x28xf32>
    tpu.vector_store %arg15[%c0_85, %c0_86], %134 {strides = array<i32>} : memref<56x28xf32, #tpu.memory_space<vmem>>, vector<56x28xf32>,
    return
  }
  func.func @transform_0(%arg0: i32) -> (i32, i32) {
    %c0_i32 = arith.constant 0 : i32
    %c0_i32_0 = arith.constant 0 : i32
    %c0_i32_1 = arith.constant 0 : i32
    return %c0_i32, %c0_i32_0 : i32, i32
  }
  func.func @transform_1(%arg0: i32) -> (i32, i32) {
    %c0_i32 = arith.constant 0 : i32
    %c0_i32_0 = arith.constant 0 : i32
    %c0_i32_1 = arith.constant 0 : i32
    return %c0_i32, %c0_i32_0 : i32, i32
  }
  func.func @transform_2(%arg0: i32) -> (i32, i32, i32) {
    %c0_i32 = arith.constant 0 : i32
    %c0_i32_0 = arith.constant 0 : i32
    %c0_i32_1 = arith.constant 0 : i32
    %c0_i32_2 = arith.constant 0 : i32
    return %c0_i32, %c0_i32_0, %c0_i32_1 : i32, i32, i32
  }
  func.func @transform_3(%arg0: i32) -> (i32, i32, i32) {
    %c0_i32 = arith.constant 0 : i32
    %c0_i32_0 = arith.constant 0 : i32
    %c0_i32_1 = arith.constant 0 : i32
    %c0_i32_2 = arith.constant 0 : i32
    return %c0_i32, %c0_i32_0, %c0_i32_1 : i32, i32, i32
  }
  func.func @transform_4(%arg0: i32) -> (i32, i32, i32) {
    %c0_i32 = arith.constant 0 : i32
    %c0_i32_0 = arith.constant 0 : i32
    %c0_i32_1 = arith.constant 0 : i32
    %c0_i32_2 = arith.constant 0 : i32
    return %c0_i32, %c0_i32_0, %c0_i32_1 : i32, i32, i32
  }
  func.func @transform_5(%arg0: i32) -> (i32, i32, i32) {
    %c0_i32 = arith.constant 0 : i32
    %c0_i32_0 = arith.constant 0 : i32
    %c0_i32_1 = arith.constant 0 : i32
    %c0_i32_2 = arith.constant 0 : i32
    return %c0_i32, %c0_i32_0, %c0_i32_1 : i32, i32, i32
  }
  func.func @transform_6(%arg0: i32) -> (i32, i32) {
    %c0_i32 = arith.constant 0 : i32
    %c0_i32_0 = arith.constant 0 : i32
    %c0_i32_1 = arith.constant 0 : i32
    return %c0_i32, %c0_i32_0 : i32, i32
  }
  func.func @transform_7(%arg0: i32) -> (i32, i32) {
    %c0_i32 = arith.constant 0 : i32
    %c0_i32_0 = arith.constant 0 : i32
    %c0_i32_1 = arith.constant 0 : i32
    return %c0_i32, %c0_i32_0 : i32, i32
  }
  func.func @transform_8(%arg0: i32) -> (i32, i32) {
    %c0_i32 = arith.constant 0 : i32
    %c0_i32_0 = arith.constant 0 : i32
    %c0_i32_1 = arith.constant 0 : i32
    return %c0_i32, %c0_i32_0 : i32, i32
  }
  func.func @transform_9(%arg0: i32) -> (i32, i32) {
    %c0_i32 = arith.constant 0 : i32
    %c0_i32_0 = arith.constant 0 : i32
    %c0_i32_1 = arith.constant 0 : i32
    return %c0_i32, %c0_i32_0 : i32, i32
  }
  func.func @transform_10(%arg0: i32) -> (i32, i32) {
    %c0_i32 = arith.constant 0 : i32
    %c0_i32_0 = arith.constant 0 : i32
    %c0_i32_1 = arith.constant 0 : i32
    return %c0_i32, %c0_i32_0 : i32, i32
  }
  func.func @transform_11(%arg0: i32) -> (i32, i32) {
    %c0_i32 = arith.constant 0 : i32
    %c0_i32_0 = arith.constant 0 : i32
    %c0_i32_1 = arith.constant 0 : i32
    return %c0_i32, %c0_i32_0 : i32, i32
  }
  func.func @transform_12(%arg0: i32) -> (i32, i32) {
    %c0_i32 = arith.constant 0 : i32
    %c0_i32_0 = arith.constant 0 : i32
    %c0_i32_1 = arith.constant 0 : i32
    return %c0_i32, %c0_i32_0 : i32, i32
  }
  func.func @transform_13(%arg0: i32) -> (i32, i32) {
    %c0_i32 = arith.constant 0 : i32
    %c0_i32_0 = arith.constant 0 : i32
    %c0_i32_1 = arith.constant 0 : i32
    return %c0_i32, %c0_i32_0 : i32, i32
  }
  func.func @transform_14(%arg0: i32) -> (i32, i32) {
    %c0_i32 = arith.constant 0 : i32
    %c0_i32_0 = arith.constant 0 : i32
    %c0_i32_1 = arith.constant 0 : i32
    return %c0_i32, %c0_i32_0 : i32, i32
  }
}

</mosaic_0001>

<bundles_post_ra>
// kernel: decoder_forward.1
= control target key start
LH: loop header
LB: loop body
LE: loop exit
PB: predicated region body
PF: predicated region fallthrough
CT: control target
= control target key end

     0   :  { %s4621_s0 = inlined_call_operand.vmem [shape: f32[28,384], index: 0, kind: input, shape index: {}]   ;;  %s4622_s1 = inlined_call_operand.vmem [shape: f32[384,224], index: 1, kind: input, shape index: {}]   ;;  %s4623_s2 = inlined_call_operand.vmem [shape: f32[3,224,224], index: 2, kind: input, shape index: {}]   ;;  %s4624_s3 = inlined_call_operand.vmem [shape: f32[3,28,28], index: 3, kind: input, shape index: {}]   ;;  %s4625_s4 = inlined_call_operand.vmem [shape: f32[2,224,28], index: 4, kind: input, shape index: {}]   ;;  %s4626_s5 = inlined_call_operand.vmem [shape: f32[2,56,28], index: 5, kind: input, shape index: {}]   ;;  %s4627_s6 = inlined_call_operand.vmem [shape: f32[224,16], index: 6, kind: input, shape index: {}]   ;;  %s4628_s7 = inlined_call_operand.vmem [shape: f32[16,224], index: 7, kind: input, shape index: {}]   ;;  %s4629_s8 = inlined_call_operand.vmem [shape: f32[1,16], index: 8, kind: input, shape index: {}]   ;;  %s4630_s9 = inlined_call_operand.vmem [shape: f32[1,16], index: 9, kind: input, shape index: {}]   ;;  %s4631_s10 = inlined_call_operand.vmem [shape: f32[1,16], index: 10, kind: input, shape index: {}]   ;;  %s4632_s11 = inlined_call_operand.vmem [shape: f32[1,16], index: 11, kind: input, shape index: {}]   ;;  %s4633_s12 = inlined_call_operand.<no memory space> [shape: f32[1,1], index: 12, kind: input, shape index: {}]   ;;  %s4634_s14 = inlined_call_operand.hbm [shape: f32[56,28], index: 14, kind: output, shape index: {}]   ;;  %s4635_s13 = inlined_call_operand.<no memory space> [shape: f32[1,1], index: 13, kind: input, shape index: {}]  }
   0x1   :  { %v19_v0 = vstv %s4633_s12  ;;  %v21_v1 = vstv %s4635_s13 }
   0x2   :  { %20 = vst [vmem:[#allocation2] sm:$0x1] %v19_v0  ;;  %22 = vst [vmem:[#allocation3] sm:$0x1] %v21_v1 }
   0x3   :  { %v95_v2 = vld [vmem:[%s4622_s1 + $0xf8] sm:$0xff]  ;;  %v94_v3 = vld [vmem:[%s4622_s1 + $0xf0] sm:$0xff]  ;;  %v93_v4 = vld [vmem:[%s4622_s1 + $0xe8] sm:$0xff]  ;;  %v2743_v6 = vmov 0.0  }
   0x4   :  { %160 = vmatprep.subr.mxu0 %v95_v2  ;;  %v92_v5 = vld [vmem:[%s4622_s1 + $0xe0] sm:$0xff]  ;;  %313 = vmatprep.mubr.f32.mxu1 %v2743_v6  ;;  %v91_v7 = vld [vmem:[%s4622_s1 + $0xd8] sm:$0xff]  ;;  %v90_v8 = vld [vmem:[%s4622_s1 + $0xd0] sm:$0xff] }
   0x5   :  { %161 = vmatpush1.msra.mxu0 %v94_v3  ;;  %v89_v9 = vld [vmem:[%s4622_s1 + $0xc8] sm:$0xff]  ;;  %v88_v10 = vld [vmem:[%s4622_s1 + $0xc0] sm:$0xff]  ;;  %v87_v11 = vld [vmem:[%s4622_s1 + $0xb8] sm:$0xff] }
   0x6   :  { %162 = vmatprep.subr.mxu0 %v93_v4  ;;  %v86_v12 = vld [vmem:[%s4622_s1 + $0xb0] sm:$0xff]  ;;  %v85_v13 = vld [vmem:[%s4622_s1 + $0xa8] sm:$0xff]  ;;  %v84_v14 = vld [vmem:[%s4622_s1 + $0xa0] sm:$0xff] }
   0x7   :  { %163 = vmatpush1.msra.mxu0 %v92_v5  ;;  %v83_v15 = vld [vmem:[%s4622_s1 + $0x98] sm:$0xff]  ;;  %v82_v17 = vld [vmem:[%s4622_s1 + $0x90] sm:$0xff]  ;;  %v157_v19 = vld [vmem:[%s4622_s1 + $0x2e8] sm:$0xff] }
   0x8   :  { %164 = vmatprep.subr.mxu0 %v91_v7  ;;  %v159_v16 = vld [vmem:[%s4622_s1 + $0x2f8] sm:$0xff]  ;;  %v158_v18 = vld [vmem:[%s4622_s1 + $0x2f0] sm:$0xff]  ;;  %v81_v20 = vld [vmem:[%s4622_s1 + $0x88] sm:$0xff] }
   0x9   :  { %165 = vmatpush1.msra.mxu0 %v90_v8  ;;  %249 = vmatprep.subr.mxu1 %v159_v16  ;;  %v156_v21 = vld [vmem:[%s4622_s1 + $0x2e0] sm:$0xff]  ;;  %v155_v23 = vld [vmem:[%s4622_s1 + $0x2d8] sm:$0xff]  ;;  %v154_v24 = vld [vmem:[%s4622_s1 + $0x2d0] sm:$0xff] }
   0xa   :  { %166 = vmatprep.subr.mxu0 %v89_v9  ;;  %250 = vmatpush1.msra.mxu1 %v158_v18  ;;  %v80_v22 = vld [vmem:[%s4622_s1 + $0x80] sm:$0xff]  ;;  %v79_v25 = vld [vmem:[%s4622_s1 + $0x78] sm:$0xff]  ;;  %v153_v26 = vld [vmem:[%s4622_s1 + $0x2c8] sm:$0xff] }
   0xb   :  { %167 = vmatpush1.msra.mxu0 %v88_v10  ;;  %251 = vmatprep.subr.mxu1 %v157_v19  ;;  %v78_v27 = vld [vmem:[%s4622_s1 + $0x70] sm:$0xff]  ;;  %v152_v28 = vld [vmem:[%s4622_s1 + $0x2c0] sm:$0xff]  ;;  %v77_v29 = vld [vmem:[%s4622_s1 + $0x68] sm:$0xff] }
   0xc   :  { %168 = vmatprep.subr.mxu0 %v87_v11  ;;  %252 = vmatpush1.msra.mxu1 %v156_v21  ;;  %v151_v30 = vld [vmem:[%s4622_s1 + $0x2b8] sm:$0xff]  ;;  %v76_v31 = vld [vmem:[%s4622_s1 + $0x60] sm:$0xff]  ;;  %v150_v32 = vld [vmem:[%s4622_s1 + $0x2b0] sm:$0xff] }
   0xd   :  { %169 = vmatpush1.msra.mxu0 %v86_v12  ;;  %253 = vmatprep.subr.mxu1 %v155_v23  ;;  %v75_v33 = vld [vmem:[%s4622_s1 + $0x58] sm:$0xff]  ;;  %v149_v34 = vld [vmem:[%s4622_s1 + $0x2a8] sm:$0xff]  ;;  %v74_v35 = vld [vmem:[%s4622_s1 + $0x50] sm:$0xff] }
   0xe   :  { %170 = vmatprep.subr.mxu0 %v85_v13  ;;  %254 = vmatpush1.msra.mxu1 %v154_v24  ;;  %v148_v36 = vld [vmem:[%s4622_s1 + $0x2a0] sm:$0xff]  ;;  %v73_v37 = vld [vmem:[%s4622_s1 + $0x48] sm:$0xff]  ;;  %v147_v38 = vld [vmem:[%s4622_s1 + $0x298] sm:$0xff] }
   0xf   :  { %171 = vmatpush1.msra.mxu0 %v84_v14  ;;  %255 = vmatprep.subr.mxu1 %v153_v26  ;;  %v72_v39 = vld [vmem:[%s4622_s1 + $0x40] sm:$0xff]  ;;  %v146_v40 = vld [vmem:[%s4622_s1 + $0x290] sm:$0xff]  ;;  %v71_v41 = vld [vmem:[%s4622_s1 + $0x38] sm:$0xff] }
  0x10   :  { %172 = vmatprep.subr.mxu0 %v83_v15  ;;  %256 = vmatpush1.msra.mxu1 %v152_v28  ;;  %v145_v42 = vld [vmem:[%s4622_s1 + $0x288] sm:$0xff]  ;;  %v70_v43 = vld [vmem:[%s4622_s1 + $0x30] sm:$0xff]  ;;  %v144_v44 = vld [vmem:[%s4622_s1 + $0x280] sm:$0xff] }
  0x11   :  { %173 = vmatpush1.msra.mxu0 %v82_v17  ;;  %257 = vmatprep.subr.mxu1 %v151_v30  ;;  %v69_v45 = vld [vmem:[%s4622_s1 + $0x28] sm:$0xff]  ;;  %v143_v46 = vld [vmem:[%s4622_s1 + $0x278] sm:$0xff]  ;;  %v68_v47 = vld [vmem:[%s4622_s1 + $0x20] sm:$0xff] }
  0x12   :  { %174 = vmatprep.subr.mxu0 %v81_v20  ;;  %258 = vmatpush1.msra.mxu1 %v150_v32  ;;  %v142_v48 = vld [vmem:[%s4622_s1 + $0x270] sm:$0xff]  ;;  %v67_v49 = vld [vmem:[%s4622_s1 + $0x18] sm:$0xff]  ;;  %v141_v50 = vld [vmem:[%s4622_s1 + $0x268] sm:$0xff] }
  0x13   :  { %175 = vmatpush1.msra.mxu0 %v80_v22  ;;  %259 = vmatprep.subr.mxu1 %v149_v34  ;;  %v66_v51 = vld [vmem:[%s4622_s1 + $0x10] sm:$0xff]  ;;  %v140_v52 = vld [vmem:[%s4622_s1 + $0x260] sm:$0xff]  ;;  %v65_v53 = vld [vmem:[%s4622_s1 + $0x8] sm:$0xff] }
  0x14   :  { %176 = vmatprep.subr.mxu0 %v79_v25  ;;  %260 = vmatpush1.msra.mxu1 %v148_v36  ;;  %v139_v54 = vld [vmem:[%s4622_s1 + $0x258] sm:$0xff]  ;;  %v64_v55 = vld [vmem:[%s4622_s1] sm:$0xff]  ;;  %v138_v56 = vld [vmem:[%s4622_s1 + $0x250] sm:$0xff] }
  0x15   :  { %177 = vmatpush1.msra.mxu0 %v78_v27  ;;  %261 = vmatprep.subr.mxu1 %v147_v38  ;;  %v127_v57 = vld [vmem:[%s4622_s1 + $0x1f8] sm:$0xff]  ;;  %v137_v58 = vld [vmem:[%s4622_s1 + $0x248] sm:$0xff]  ;;  %v126_v59 = vld [vmem:[%s4622_s1 + $0x1f0] sm:$0xff] }
  0x16   :  { %178 = vmatprep.subr.mxu0 %v77_v29  ;;  %262 = vmatpush1.msra.mxu1 %v146_v40  ;;  %v136_v60 = vld [vmem:[%s4622_s1 + $0x240] sm:$0xff]  ;;  %v125_v61 = vld [vmem:[%s4622_s1 + $0x1e8] sm:$0xff]  ;;  %v135_v62 = vld [vmem:[%s4622_s1 + $0x238] sm:$0xff] }
  0x17   :  { %179 = vmatpush1.msra.mxu0 %v76_v31  ;;  %263 = vmatprep.subr.mxu1 %v145_v42  ;;  %v124_v63 = vld [vmem:[%s4622_s1 + $0x1e0] sm:$0xff]  ;;  %v134_v0 = vld [vmem:[%s4622_s1 + $0x230] sm:$0xff]  ;;  %v123_v1 = vld [vmem:[%s4622_s1 + $0x1d8] sm:$0xff] }
  0x18   :  { %180 = vmatprep.subr.mxu0 %v75_v33  ;;  %264 = vmatpush1.msra.mxu1 %v144_v44  ;;  %v133_v2 = vld [vmem:[%s4622_s1 + $0x228] sm:$0xff]  ;;  %v122_v3 = vld [vmem:[%s4622_s1 + $0x1d0] sm:$0xff]  ;;  %v132_v4 = vld [vmem:[%s4622_s1 + $0x220] sm:$0xff] }
  0x19   :  { %181 = vmatpush1.msra.mxu0 %v74_v35  ;;  %265 = vmatprep.subr.mxu1 %v143_v46  ;;  %v121_v5 = vld [vmem:[%s4622_s1 + $0x1c8] sm:$0xff]  ;;  %v131_v7 = vld [vmem:[%s4622_s1 + $0x218] sm:$0xff]  ;;  %v120_v8 = vld [vmem:[%s4622_s1 + $0x1c0] sm:$0xff] }
  0x1a   :  { %182 = vmatprep.subr.mxu0 %v73_v37  ;;  %266 = vmatpush1.msra.mxu1 %v142_v48  ;;  %v130_v9 = vld [vmem:[%s4622_s1 + $0x210] sm:$0xff]  ;;  %v119_v10 = vld [vmem:[%s4622_s1 + $0x1b8] sm:$0xff]  ;;  %v129_v11 = vld [vmem:[%s4622_s1 + $0x208] sm:$0xff] }
  0x1b   :  { %183 = vmatpush1.msra.mxu0 %v72_v39  ;;  %267 = vmatprep.subr.mxu1 %v141_v50  ;;  %v118_v12 = vld [vmem:[%s4622_s1 + $0x1b0] sm:$0xff]  ;;  %v128_v13 = vld [vmem:[%s4622_s1 + $0x200] sm:$0xff] }
  0x1c   :  { %184 = vmatprep.subr.mxu0 %v71_v41  ;;  %268 = vmatpush1.msra.mxu1 %v140_v52 }
  0x1d   :  { %185 = vmatpush1.msra.mxu0 %v70_v43  ;;  %269 = vmatprep.subr.mxu1 %v139_v54 }
  0x1e   :  { %186 = vmatprep.subr.mxu0 %v69_v45  ;;  %270 = vmatpush1.msra.mxu1 %v138_v56 }
  0x1f   :  { %187 = vmatpush1.msra.mxu0 %v68_v47  ;;  %271 = vmatprep.subr.mxu1 %v137_v58 }
  0x20   :  { %188 = vmatprep.subr.mxu0 %v67_v49  ;;  %272 = vmatpush1.msra.mxu1 %v136_v60 }
  0x21   :  { %189 = vmatpush1.msra.mxu0 %v66_v51  ;;  %273 = vmatprep.subr.mxu1 %v135_v62 }
  0x22   :  { %190 = vmatprep.subr.mxu0 %v65_v53  ;;  %274 = vmatpush1.msra.mxu1 %v134_v0 }
  0x23   :  { %191 = vmatpush1.msra.mxu0 %v64_v55  ;;  %275 = vmatprep.subr.mxu1 %v133_v2 }
  0x24   :  { %192 = vmatprep.subr.mxu0 %v127_v57  ;;  %276 = vmatpush1.msra.mxu1 %v132_v4 }
  0x25   :  { %193 = vmatpush2.msra.mxu0 %v126_v59  ;;  %277 = vmatprep.subr.mxu1 %v131_v7 }
  0x26   :  { %194 = vmatprep.subr.mxu0 %v125_v61 }
  0x27   :  { %195 = vmatpush2.msra.mxu0 %v124_v63 }
  0x28   :  { %196 = vmatprep.subr.mxu0 %v123_v1 }
  0x29   :  { %197 = vmatpush2.msra.mxu0 %v122_v3 }
  0x2a   :  { %198 = vmatprep.subr.mxu0 %v121_v5 }
  0x2b   :  { %23 = vsyncpa [#allocation5], 0  ;;  %199 = vmatpush2.msra.mxu0 %v120_v8  ;;  %v117_v14 = vld [vmem:[%s4622_s1 + $0x1a8] sm:$0xff]  ;;  %278 = vmatpush1.msra.mxu1 %v130_v9  ;;  %v54_v15 = vld [vmem:[%s4621_s0 + $0x10] sm:$0xff]  ;;  %vm349_vm0 = vcmask 785408   ;;  %vm340_vm1 = vcmask 1043456  }
  0x2c   :  { %200 = vmatprep.subr.mxu0 %v119_v10  ;;  %v116_v16 = vld [vmem:[%s4622_s1 + $0x1a0] sm:$0xff]  ;;  %279 = vmatprep.subr.mxu1 %v129_v11  ;;  %v53_v17 = vld [vmem:[%s4621_s0 + $0x8] sm:$0xff]  ;;  %v115_v18 = vld [vmem:[%s4622_s1 + $0x198] sm:$0xff]  ;;  %vm355_vm2 = vcmask 781312   ;;  %vm395_vm3 = vcmask 1040384   ;;  %vm540_vm4 = vcmask 130048  }
  0x2d   :  { %201 = vmatpush2.msra.mxu0 %v118_v12  ;;  %280 = vmatpush1.msra.mxu1 %v128_v13  ;;  %v114_v19 = vld [vmem:[%s4622_s1 + $0x190] sm:$0xff]  ;;  %v113_v20 = vld [vmem:[%s4622_s1 + $0x188] sm:$0xff]  ;;  %v112_v22 = vld [vmem:[%s4622_s1 + $0x180] sm:$0xff]  ;;  %vm967_vm5 = vcmask 228352   ;;  %vm2745_vm6 = vmmov 0  }
  0x2e   :  { %202 = vmatprep.subr.mxu0 %v117_v14  ;;  %314 = vmatmul.mubr.f32.vlgmr.msra.gmra.mxu1 %v54_v15  ;;  %v57_v21 = vld [vmem:[%s4621_s0 + $0x28] sm:$0xff]  ;;  %v111_v23 = vld [vmem:[%s4622_s1 + $0x178] sm:$0xff]  ;;  %v110_v25 = vld [vmem:[%s4622_s1 + $0x170] sm:$0xff] }
  0x2f   :  { %203 = vmatpush2.msra.mxu0 %v116_v16  ;;  %224 = vmatprep.mubr.f32.mxu0 %v53_v17  ;;  %v413_v24 = vld [vmem:[%s4627_s6 + $0x78] sm:$0xff]  ;;  %v109_v26 = vld [vmem:[%s4622_s1 + $0x168] sm:$0xff]  ;;  %v60_v27 = vld [vmem:[%s4621_s0 + $0x40] sm:$0xff] }
  0x30   :  { %204 = vmatprep.subr.mxu0 %v115_v18  ;;  %319 = vmatprep.mubr.f32.mxu1 %v2743_v6  ;;  %v108_v28 = vld [vmem:[%s4622_s1 + $0x160] sm:$0xff]  ;;  %v107_v29 = vld [vmem:[%s4622_s1 + $0x158] sm:$0xff]  ;;  %v412_v30 = vld [vmem:[%s4627_s6 + $0x70] sm:$0xff] }
  0x31   :  { %205 = vmatpush2.msra.mxu0 %v114_v19  ;;  %429 = vmatprep.subr.mxu1 %v2743_v6  ;;  %v106_v31 = vld [vmem:[%s4622_s1 + $0x150] sm:$0xff]  ;;  %v105_v32 = vld [vmem:[%s4622_s1 + $0x148] sm:$0xff]  ;;  %v63_v33 = vld [vmem:[%s4621_s0 + $0x58] sm:$0xf] }
  0x32   :  { %206 = vmatprep.subr.mxu0 %v113_v20  ;;  %320 = vmatmul.mubr.f32.gmra.mxu1 %v57_v21  ;;  %v104_v34 = vld [vmem:[%s4622_s1 + $0x140] sm:$0xff]  ;;  %v411_v35 = vld [vmem:[%s4627_s6 + $0x68] sm:$0xff]  ;;  %v103_v36 = vld [vmem:[%s4622_s1 + $0x138] sm:$0xff] }
  0x33   :  { %207 = vmatpush2.msra.mxu0 %v112_v22  ;;  %325 = vmatprep.mubr.f32.mxu1 %v2743_v6  ;;  %v102_v37 = vld [vmem:[%s4622_s1 + $0x130] sm:$0xff]  ;;  %v410_v38 = vld [vmem:[%s4627_s6 + $0x60] sm:$0xff]  ;;  %v101_v39 = vld [vmem:[%s4622_s1 + $0x128] sm:$0xff] }
  0x34   :  { %208 = vmatprep.subr.mxu0 %v111_v23  ;;  %430 = vmatpush1.msra.mxu1 %v413_v24  ;;  %v100_v40 = vld [vmem:[%s4622_s1 + $0x120] sm:$0xff]  ;;  %v409_v41 = vld [vmem:[%s4627_s6 + $0x58] sm:$0xff]  ;;  %v98_v43 = vld [vmem:[%s4622_s1 + $0x110] sm:$0xff] }
  0x35   :  { %209 = vmatpush2.msra.mxu0 %v110_v25  ;;  %431 = vmatprep.subr.mxu1 %v2743_v6  ;;  %v99_v42 = vld [vmem:[%s4622_s1 + $0x118] sm:$0xff]  ;;  %v408_v44 = vld [vmem:[%s4627_s6 + $0x50] sm:$0xff]  ;;  %v97_v45 = vld [vmem:[%s4622_s1 + $0x108] sm:$0xff] }
  0x36   :  { %210 = vmatprep.subr.mxu0 %v109_v26  ;;  %326 = vmatmul.mubr.f32.gmra.mxu1 %v60_v27  ;;  %v96_v46 = vld [vmem:[%s4622_s1 + $0x100] sm:$0xff]  ;;  %v407_v47 = vld [vmem:[%s4627_s6 + $0x48] sm:$0xff]  ;;  %v405_v51 = vld [vmem:[%s4627_s6 + $0x38] sm:$0xff] }
  0x37   :  { %211 = vmatpush2.msra.mxu0 %v108_v28  ;;  %331 = vmatprep.mubr.f32.mxu1 %v2743_v6  ;;  %v52_v48 = vld [vmem:[%s4621_s0] sm:$0xff]  ;;  %v55_v52 = vld [vmem:[%s4621_s0 + $0x18] sm:$0xff]  ;;  %v58_v54 = vld [vmem:[%s4621_s0 + $0x30] sm:$0xff] }
  0x38   :  { %212 = vmatprep.subr.mxu0 %v107_v29  ;;  %432 = vmatpush1.msra.mxu1 %v412_v30  ;;  %v56_v49 = vld [vmem:[%s4621_s0 + $0x20] sm:$0xff]  ;;  %v59_v53 = vld [vmem:[%s4621_s0 + $0x38] sm:$0xff]  ;;  %v62_v55 = vld [vmem:[%s4621_s0 + $0x50] sm:$0xf] }
  0x39   :  { %213 = vmatpush2.msra.mxu0 %v106_v31  ;;  %433 = vmatprep.subr.mxu1 %v2743_v6  ;;  %v406_v50 = vld [vmem:[%s4627_s6 + $0x40] sm:$0xff]  ;;  %v61_v56 = vld [vmem:[%s4621_s0 + $0x48] sm:$0xf]  ;;  %v404_v57 = vld [vmem:[%s4627_s6 + $0x30] sm:$0xff] }
  0x3a   :  { %214 = vmatprep.subr.mxu0 %v105_v32  ;;  %332 = vmatmul.mubr.f32.gmra.mxu1 %v63_v33  ;;  %v403_v58 = vld [vmem:[%s4627_s6 + $0x28] sm:$0xff]  ;;  %v402_v59 = vld [vmem:[%s4627_s6 + $0x20] sm:$0xff]  ;;  %v401_v60 = vld [vmem:[%s4627_s6 + $0x18] sm:$0xff] }
  0x3b   :  { %215 = vmatpush2.msra.mxu0 %v104_v34  ;;  %434 = vmatpush1.msra.mxu1 %v411_v35  ;;  %v400_v61 = vld [vmem:[%s4627_s6 + $0x10] sm:$0xff]  ;;  %v399_v62 = vld [vmem:[%s4627_s6 + $0x8] sm:$0xff]  ;;  %v398_v63 = vld [vmem:[%s4627_s6] sm:$0xff] }
  0x3c   :  { %216 = vmatprep.subr.mxu0 %v103_v36  ;;  %435 = vmatprep.subr.mxu1 %v2743_v6  ;;  %v425_v0 = vld [vmem:[%s4627_s6 + $0xd8] sm:$0xff]  ;;  %v424_v1 = vld [vmem:[%s4627_s6 + $0xd0] sm:$0xff]  ;;  %v423_v2 = vld [vmem:[%s4627_s6 + $0xc8] sm:$0xff] }
  0x3d   :  { %217 = vmatpush2.msra.mxu0 %v102_v37  ;;  %436 = vmatpush1.msra.mxu1 %v410_v38  ;;  %v422_v3 = vld [vmem:[%s4627_s6 + $0xc0] sm:$0xff]  ;;  %v421_v4 = vld [vmem:[%s4627_s6 + $0xb8] sm:$0xff]  ;;  %v420_v5 = vld [vmem:[%s4627_s6 + $0xb0] sm:$0xff] }
  0x3e   :  { %218 = vmatprep.subr.mxu0 %v101_v39  ;;  %437 = vmatprep.subr.mxu1 %v2743_v6  ;;  %v419_v7 = vld [vmem:[%s4627_s6 + $0xa8] sm:$0xff]  ;;  %v418_v8 = vld [vmem:[%s4627_s6 + $0xa0] sm:$0xff]  ;;  %v417_v9 = vld [vmem:[%s4627_s6 + $0x98] sm:$0xff] }
  0x3f   :  { %219 = vmatpush2.msra.mxu0 %v100_v40  ;;  %438 = vmatpush1.msra.mxu1 %v409_v41  ;;  %v416_v10 = vld [vmem:[%s4627_s6 + $0x90] sm:$0xff]  ;;  %v415_v11 = vld [vmem:[%s4627_s6 + $0x88] sm:$0xff]  ;;  %v414_v12 = vld [vmem:[%s4627_s6 + $0x80] sm:$0xff] }
  0x40   :  { %220 = vmatprep.subr.mxu0 %v99_v42  ;;  %439 = vmatprep.subr.mxu1 %v2743_v6 }
  0x41   :  { %221 = vmatpush2.msra.mxu0 %v98_v43  ;;  %440 = vmatpush1.msra.mxu1 %v408_v44 }
  0x42   :  { %222 = vmatprep.subr.mxu0 %v97_v45  ;;  %441 = vmatprep.subr.mxu1 %v2743_v6 }
  0x43   :  { %223 = vmatpush2.msra.mxu0 %v96_v46  ;;  %442 = vmatpush1.msra.mxu1 %v407_v47 }
  0x44   :  { %225 = vmatmul.mubr.f32.vlgmr.msra.gmra.mxu0 %v52_v48  ;;  %443 = vmatprep.subr.mxu1 %v2743_v6 }
  0x45   :  { %230 = vmatprep.mubr.f32.mxu0 %v56_v49  ;;  %444 = vmatpush1.msra.mxu1 %v406_v50 }
  0x46   :  { %445 = vmatprep.subr.mxu1 %v2743_v6 }
  0x47   :  { %446 = vmatpush1.msra.mxu1 %v405_v51 }
  0x48   :  { %231 = vmatmul.mubr.f32.gmra.mxu0 %v55_v52  ;;  %447 = vmatprep.subr.mxu1 %v2743_v6 }
  0x49   :  { %236 = vmatprep.mubr.f32.mxu0 %v59_v53  ;;  %448 = vmatpush1.msra.mxu1 %v404_v57 }
  0x4a   :  { %449 = vmatprep.subr.mxu1 %v2743_v6 }
  0x4b   :  { %450 = vmatpush1.msra.mxu1 %v403_v58 }
  0x4c   :  { %237 = vmatmul.mubr.f32.gmra.mxu0 %v58_v54  ;;  %451 = vmatprep.subr.mxu1 %v2743_v6 }
  0x4d   :  { %242 = vmatprep.mubr.f32.mxu0 %v62_v55  ;;  %452 = vmatpush1.msra.mxu1 %v402_v59 }
  0x4e   :  { %453 = vmatprep.subr.mxu1 %v2743_v6 }
  0x4f   :  { %454 = vmatpush1.msra.mxu1 %v401_v60 }
  0x50   :  { %243 = vmatmul.mubr.f32.gmra.mxu0 %v61_v56  ;;  %455 = vmatprep.subr.mxu1 %v2743_v6 }
  0x51   :  { %608 = vmatprep.mubr.f32.mxu0 %v2743_v6  ;;  %456 = vmatpush1.msra.mxu1 %v400_v61 }
  0x52   :  { %457 = vmatprep.subr.mxu1 %v2743_v6 }
  0x53   :  { %458 = vmatpush1.msra.mxu1 %v399_v62 }
  0x54   :  { %459 = vmatprep.subr.mxu1 %v2743_v6 }
  0x55   :  { %460 = vmatpush1.msra.mxu1 %v398_v63 }
  0x56   :  { %469 = vmatprep.subr.mxu1 %v2743_v6 }
  0x57   :  { %470 = vmatpush2.msra.mxu1 %v425_v0 }
  0x58   :  { %471 = vmatprep.subr.mxu1 %v2743_v6 }
  0x59   :  { %472 = vmatpush2.msra.mxu1 %v424_v1 }
  0x5a   :  { %473 = vmatprep.subr.mxu1 %v2743_v6 }
  0x5b   :  { %474 = vmatpush2.msra.mxu1 %v423_v2 }
  0x5c   :  { %475 = vmatprep.subr.mxu1 %v2743_v6 }
  0x5d   :  { %476 = vmatpush2.msra.mxu1 %v422_v3 }
  0x5e   :  { %477 = vmatprep.subr.mxu1 %v2743_v6 }
  0x5f   :  { %478 = vmatpush2.msra.mxu1 %v421_v4 }
  0x60   :  { %479 = vmatprep.subr.mxu1 %v2743_v6 }
  0x61   :  { %480 = vmatpush2.msra.mxu1 %v420_v5 }
  0x62   :  { %481 = vmatprep.subr.mxu1 %v2743_v6 }
  0x63   :  { %482 = vmatpush2.msra.mxu1 %v419_v7 }
  0x64   :  { %483 = vmatprep.subr.mxu1 %v2743_v6 }
  0x65   :  { %484 = vmatpush2.msra.mxu1 %v418_v8 }
  0x66   :  { %485 = vmatprep.subr.mxu1 %v2743_v6 }
  0x67   :  { %486 = vmatpush2.msra.mxu1 %v417_v9 }
  0x68   :  { %487 = vmatprep.subr.mxu1 %v2743_v6 }
  0x69   :  { %488 = vmatpush2.msra.mxu1 %v416_v10 }
  0x6a   :  { %489 = vmatprep.subr.mxu1 %v2743_v6 }
  0x6b   :  { %490 = vmatpush2.msra.mxu1 %v415_v11 }
  0x6c   :  { %491 = vmatprep.subr.mxu1 %v2743_v6 }
  0x6d   :  { %492 = vmatpush2.msra.mxu1 %v414_v12 }
  0xee   :  { %v315_v13 = vpop.f32.mrf.mxu1 }
  0xf0   :  { %v317_v14 = vpop.f32.mrf.mxu1 }
  0xf2   :  { %v321_v15 = vpop.f32.mrf.mxu1 }
  0xf4   :  { %v323_v16 = vpop.f32.mrf.mxu1 }
  0xf6   :  { %v327_v19 = vpop.f32.mrf.mxu1 }
  0xf8   :  { %v329_v24 = vpop.f32.mrf.mxu1 }
  0xfa   :  { %v333_v33 = vpop.f32.mrf.mxu1 }
  0xfc   :  { %v335_v49 = vpop.f32.mrf.mxu1 }
 0x104   :  { %v226_v17 = vpop.f32.mrf.mxu0 }
 0x105   :  { %v3278_v26 = vadd.f32 %v315_v13, %v226_v17 }
 0x106   :  { %v228_v18 = vpop.f32.mrf.mxu0 }
 0x107   :  { %v3272_v21 = vadd.f32 %v317_v14, %v228_v18  ;;  %v364_v36 = vmul.f32 %v3278_v26, %v3278_v26 }
 0x108   :  { %v232_v20 = vpop.f32.mrf.mxu0 }
 0x109   :  { %v3274_v22 = vadd.f32 %v321_v15, %v232_v20  ;;  %v365_v30 = vmul.f32 %v3272_v21, %v3272_v21  ;;  %v350_v37 = vsel %vm349_vm0, %v3272_v21, 0.0 }
 0x10a   :  { %v234_v23 = vpop.f32.mrf.mxu0 }
 0x10b   :  { %v3276_v25 = vadd.f32 %v323_v16, %v234_v23  ;;  %v366_v31 = vmul.f32 %v3274_v22, %v3274_v22  ;;  %v338_v38 = vadd.f32 %v3274_v22, %v3278_v26  ;;  %v382_v45 = vsel %vm349_vm0, %v365_v30, 0.0 }
 0x10c   :  { %v238_v27 = vpop.f32.mrf.mxu0 }
 0x10d   :  { %v367_v28 = vmul.f32 %v3276_v25, %v3276_v25  ;;  %v3282_v29 = vadd.f32 %v327_v19, %v238_v27  ;;  %v351_v34 = vsel %vm349_vm0, %v3276_v25, 0.0  ;;  %v372_v46 = vadd.f32 %v366_v31, %v364_v36  ;;  %v3328_v36 = vld [vmem:[%s4628_s7 + $0x18] sm:$0xff] }
 0x10e   :  { %v240_v32 = vpop.f32.mrf.mxu0  ;;  %v352_v47 = vadd.f32 %v351_v34, %v350_v37  ;;  %572 = vmatprep.subr.mxu0 %v3328_v36  ;;  %v3334_v37 = vld [vmem:[%s4628_s7 + $0x10] sm:$0xff] }
 0x10f   :  { %v3290_v35 = vadd.f32 %v329_v24, %v240_v32  ;;  %v368_v39 = vmul.f32 %v3282_v29, %v3282_v29  ;;  %v383_v41 = vsel %vm349_vm0, %v367_v28, 0.0  ;;  %v339_v48 = vadd.f32 %v338_v38, %v3282_v29  ;;  %573 = vmatpush1.msra.mxu0 %v3334_v37  ;;  %v3340_v38 = vld [vmem:[%s4628_s7 + $0x8] sm:$0xff] }
 0x110   :  { %v244_v40 = vpop.f32.mrf.mxu0  ;;  %v384_v55 = vadd.f32 %v383_v41, %v382_v45  ;;  %574 = vmatprep.subr.mxu0 %v3340_v38  ;;  %v2414_v41 = vld [vmem:[%s4623_s2 + $0x2b8] sm:$0xff]  ;;  %v2411_v45 = vld [vmem:[%s4623_s2 + $0x2a0] sm:$0xff] }
 0x111   :  { %v353_v42 = vsel %vm349_vm0, %v3290_v35, 0.0  ;;  %v369_v43 = vmul.f32 %v3290_v35, %v3290_v35  ;;  %v3305_v44 = vadd.f32 %v333_v33, %v244_v40  ;;  %v373_v56 = vadd.f32 %v372_v46, %v368_v39  ;;  %v3345_v39 = vld [vmem:[%s4628_s7] sm:$0xff]  ;;  %v686_v40 = vld [vmem:[%s4623_s2 + $0xf8] sm:$0xff]  ;;  %873 = vmatprep.subr.mxu1 %v2414_v41 }
 0x112   :  { %v246_v50 = vpop.f32.mrf.mxu0  ;;  %v354_v57 = vadd.f32 %v353_v42, %v352_v47  ;;  %575 = vmatpush1.msra.mxu0 %v3345_v39  ;;  %v2413_v42 = vld [vmem:[%s4623_s2 + $0x2b0] sm:$0xff]  ;;  %v2410_v46 = vld [vmem:[%s4623_s2 + $0x298] sm:$0xff]  ;;  %v2744_v41 = vmov 1966171168  }
 0x113   :  { %v385_v51 = vsel %vm349_vm0, %v369_v43, 0.0  ;;  %v341_v52 = vsel %vm340_vm1, %v3305_v44, 0.0  ;;  %v370_v53 = vmul.f32 %v3305_v44, %v3305_v44  ;;  %v3314_v54 = vadd.f32 %v335_v49, %v246_v50  ;;  %723 = vmatprep.subr.mxu0 %v686_v40  ;;  %v2412_v43 = vld [vmem:[%s4623_s2 + $0x2a8] sm:$0xff]  ;;  %v2409_v47 = vld [vmem:[%s4623_s2 + $0x290] sm:$0xff]  ;;  %v2407_v49 = vld [vmem:[%s4623_s2 + $0x280] sm:$0xff] }
 0x114   :  { %v342_v58 = vadd.f32 %v341_v52, %v339_v48  ;;  %v386_v62 = vadd.f32 %v385_v51, %v384_v55  ;;  %v2408_v48 = vld [vmem:[%s4623_s2 + $0x288] sm:$0xff]  ;;  %v2406_v50 = vld [vmem:[%s4623_s2 + $0x278] sm:$0xff]  ;;  %v2405_v51 = vld [vmem:[%s4623_s2 + $0x270] sm:$0xff] }
 0x115   :  { %v374_v59 = vsel %vm340_vm1, %v370_v53, 0.0  ;;  %v356_v60 = vsel %vm355_vm2, %v3314_v54, 0.0  ;;  %v371_v61 = vmul.f32 %v3314_v54, %v3314_v54  ;;  %v2404_v52 = vld [vmem:[%s4623_s2 + $0x268] sm:$0xff]  ;;  %v2403_v53 = vld [vmem:[%s4623_s2 + $0x260] sm:$0xff]  ;;  %v2402_v55 = vld [vmem:[%s4623_s2 + $0x258] sm:$0xff] }
 0x116   :  { %v343_v63 = vrot.slane %v342_v58, 4  ;;  %v375_v0 = vadd.f32 %v374_v59, %v373_v56  ;;  %v357_v1 = vadd.f32 %v356_v60, %v354_v57  ;;  %v2401_v56 = vld [vmem:[%s4623_s2 + $0x250] sm:$0xff]  ;;  %v2400_v57 = vld [vmem:[%s4623_s2 + $0x248] sm:$0xff]  ;;  %v2398_v59 = vld [vmem:[%s4623_s2 + $0x238] sm:$0xff] }
 0x117   :  { %v387_v2 = vsel %vm355_vm2, %v371_v61, 0.0  ;;  %v2397_v60 = vld [vmem:[%s4623_s2 + $0x230] sm:$0xff]  ;;  %v2396_v61 = vld [vmem:[%s4623_s2 + $0x228] sm:$0xff] }
 0x118   :  { %v344_v3 = vadd.f32 %v343_v63, %v342_v58  ;;  %v376_v4 = vrot.slane %v375_v0, 4  ;;  %v358_v5 = vrot.slane %v357_v1, 4  ;;  %v388_v7 = vadd.f32 %v387_v2, %v386_v62  ;;  %v2399_v58 = vld [vmem:[%s4623_s2 + $0x240] sm:$0xff]  ;;  %v2394_v63 = vld [vmem:[%s4623_s2 + $0x218] sm:$0xff] }
 0x119   :  { %v2395_v62 = vld [vmem:[%s4623_s2 + $0x220] sm:$0xff] }
 0x11a   :  { %v345_v8 = vrot.slane %v344_v3, 2  ;;  %v377_v9 = vadd.f32 %v376_v4, %v375_v0  ;;  %v359_v10 = vadd.f32 %v358_v5, %v357_v1  ;;  %v389_v11 = vrot.slane %v388_v7, 4  ;;  %v2393_v0 = vld [vmem:[%s4623_s2 + $0x210] sm:$0xff]  ;;  %v2392_v1 = vld [vmem:[%s4623_s2 + $0x208] sm:$0xff]  ;;  %v2391_v2 = vld [vmem:[%s4623_s2 + $0x200] sm:$0xff] }
 0x11b   :  { %v2389_v4 = vld [vmem:[%s4623_s2 + $0x1f0] sm:$0xff]  ;;  %v2388_v5 = vld [vmem:[%s4623_s2 + $0x1e8] sm:$0xff] }
 0x11c   :  { %v378_v12 = vrot.slane %v377_v9, 2  ;;  %v360_v13 = vrot.slane %v359_v10, 2  ;;  %v390_v14 = vadd.f32 %v389_v11, %v388_v7  ;;  %v346_v15 = vadd.f32 %v345_v8, %v344_v3  ;;  %v2390_v3 = vld [vmem:[%s4623_s2 + $0x1f8] sm:$0xff]  ;;  %v2387_v7 = vld [vmem:[%s4623_s2 + $0x1e0] sm:$0xff] }
 0x11d   :  { %v2386_v8 = vld [vmem:[%s4623_s2 + $0x1d8] sm:$0xff]  ;;  %v2383_v11 = vld [vmem:[%s4623_s2 + $0x1c0] sm:$0xff] }
 0x11e   :  { %v379_v16 = vadd.f32 %v378_v12, %v377_v9  ;;  %v361_v17 = vadd.f32 %v360_v13, %v359_v10  ;;  %v391_v18 = vrot.slane %v390_v14, 2  ;;  %v347_v24 = vrot.slane %v346_v15, 1  ;;  %v2385_v9 = vld [vmem:[%s4623_s2 + $0x1d0] sm:$0xff]  ;;  %v2384_v10 = vld [vmem:[%s4623_s2 + $0x1c8] sm:$0xff]  ;;  %v2438_v12 = vld [vmem:[%s4623_s2 + $0x378] sm:$0xff] }
 0x11f   :  { %v2437_v13 = vld [vmem:[%s4623_s2 + $0x370] sm:$0xff] }
 0x120   :  { %v362_v19 = vrot.slane %v361_v17, 1  ;;  %v392_v20 = vadd.f32 %v391_v18, %v390_v14  ;;  %v380_v23 = vrot.slane %v379_v16, 1  ;;  %v348_v32 = vadd.f32 %v347_v24, %v346_v15  ;;  %v2436_v14 = vld [vmem:[%s4623_s2 + $0x368] sm:$0xff]  ;;  %v2435_v15 = vld [vmem:[%s4623_s2 + $0x360] sm:$0xff] }
 0x121   :  { %v2432_v18 = vld [vmem:[%s4623_s2 + $0x348] sm:$0xff] }
 0x122   :  { %v393_v27 = vrot.slane %v392_v20, 1  ;;  %v381_v28 = vadd.f32 %v380_v23, %v379_v16  ;;  %v363_v30 = vadd.f32 %v362_v19, %v361_v17  ;;  %v2434_v16 = vld [vmem:[%s4623_s2 + $0x358] sm:$0xff]  ;;  %v2433_v17 = vld [vmem:[%s4623_s2 + $0x350] sm:$0xff]  ;;  %v2431_v19 = vld [vmem:[%s4623_s2 + $0x340] sm:$0xff] }
 0x123   :  { %v2429_v23 = vld [vmem:[%s4623_s2 + $0x330] sm:$0xff]  ;;  %v2428_v24 = vld [vmem:[%s4623_s2 + $0x328] sm:$0xff] }
 0x124   :  { %v394_v31 = vadd.f32 %v393_v27, %v392_v20  ;;  %v396_v34 = vsel %vm395_vm3, %v348_v32, %v381_v28  ;;  %v2430_v20 = vld [vmem:[%s4623_s2 + $0x338] sm:$0xff]  ;;  %v2427_v27 = vld [vmem:[%s4623_s2 + $0x320] sm:$0xff] }
 0x126   :  { %v397_v33 = vsel %vm395_vm3, %v363_v30, %v394_v31 }
 0x127   :  { %2377 = vmatprep.mubr.msk.f32.mxu1 %vm349_vm0, %v397_v33 }
 0x128   :  { %494 = vmatmul.mubr.f32.vlgmr.msra.gmra.mxu1 %v396_v34 }
 0x129   :  { %874 = vmatpush1.msra.mxu1 %v2413_v42  ;;  %v510_v42 = vunpack.c.l.s4 %v2744_v41  ;;  %v708_v41 = vld [vmem:[%s4623_s2 + $0x1a8] sm:$0xff] }
 0x12a   :  { %875 = vmatprep.subr.mxu1 %v2412_v43  ;;  %v512_v43 = vlaneseq }
 0x12b   :  { %876 = vmatpush1.msra.mxu1 %v2411_v45  ;;  %v511_v45 = vunpack.c.0.s8 %v510_v42  ;;  %v707_v42 = vld [vmem:[%s4623_s2 + $0x1a0] sm:$0xff] }
 0x12c   :  { %877 = vmatprep.subr.mxu1 %v2410_v46  ;;  %v3484_v46 = vshrl.u32 %v512_v43, 7  ;;  %v706_v43 = vld [vmem:[%s4623_s2 + $0x198] sm:$0xff] }
 0x12d   :  { %878 = vmatpush1.msra.mxu1 %v2409_v47 }
 0x12e   :  { %879 = vmatprep.subr.mxu1 %v2408_v48  ;;  %v3487_v47 = vsub.s32 %v511_v45, %v3484_v46  ;;  %v705_v45 = vld [vmem:[%s4623_s2 + $0x190] sm:$0xff] }
 0x12f   :  { %880 = vmatpush1.msra.mxu1 %v2407_v49 }
 0x130   :  { %881 = vmatprep.subr.mxu1 %v2406_v50 }
 0x131   :  { %882 = vmatpush1.msra.mxu1 %v2405_v51  ;;  %v505_v51 = vld [vmem:[%s4629_s8] sm:$0x1] }
 0x132   :  { %883 = vmatprep.subr.mxu1 %v2404_v52 }
 0x133   :  { %884 = vmatpush1.msra.mxu1 %v2403_v53 }
 0x134   :  { %885 = vmatprep.subr.mxu1 %v2402_v55  ;;  %v526_v55 = vld [vmem:[%s4630_s9] sm:$0x1] }
 0x135   :  { %886 = vmatpush1.msra.mxu1 %v2401_v56 }
 0x136   :  { %887 = vmatprep.subr.mxu1 %v2400_v57  ;;  %v3498_v57 = vsub.s32 0, %v3484_v46 }
 0x137   :  { %888 = vmatpush1.msra.mxu1 %v2399_v58 }
 0x138   :  { %889 = vmatprep.subr.mxu1 %v2398_v59 }
 0x139   :  { %890 = vmatpush1.msra.mxu1 %v2397_v60  ;;  %v685_v60 = vld [vmem:[%s4623_s2 + $0xf0] sm:$0xff] }
 0x13a   :  { %891 = vmatprep.subr.mxu1 %v2396_v61 }
 0x13b   :  { %892 = vmatpush1.msra.mxu1 %v2395_v62  ;;  %v684_v62 = vld [vmem:[%s4623_s2 + $0xe8] sm:$0xff] }
 0x13c   :  { %893 = vmatprep.subr.mxu1 %v2394_v63  ;;  %v683_v63 = vld [vmem:[%s4623_s2 + $0xe0] sm:$0xff] }
 0x13d   :  { %894 = vmatpush1.msra.mxu1 %v2393_v0  ;;  %v682_v0 = vld [vmem:[%s4623_s2 + $0xd8] sm:$0xff] }
 0x13e   :  { %895 = vmatprep.subr.mxu1 %v2392_v1  ;;  %v681_v1 = vld [vmem:[%s4623_s2 + $0xd0] sm:$0xff] }
 0x13f   :  { %896 = vmatpush1.msra.mxu1 %v2391_v2  ;;  %v680_v2 = vld [vmem:[%s4623_s2 + $0xc8] sm:$0xff] }
 0x140   :  { %897 = vmatprep.subr.mxu1 %v2390_v3  ;;  %v679_v3 = vld [vmem:[%s4623_s2 + $0xc0] sm:$0xff] }
 0x141   :  { %898 = vmatpush1.msra.mxu1 %v2389_v4  ;;  %v678_v4 = vld [vmem:[%s4623_s2 + $0xb8] sm:$0xff] }
 0x142   :  { %899 = vmatprep.subr.mxu1 %v2388_v5  ;;  %v677_v5 = vld [vmem:[%s4623_s2 + $0xb0] sm:$0xff] }
 0x143   :  { %900 = vmatpush1.msra.mxu1 %v2387_v7  ;;  %v676_v7 = vld [vmem:[%s4623_s2 + $0xa8] sm:$0xff] }
 0x144   :  { %901 = vmatprep.subr.mxu1 %v2386_v8  ;;  %v675_v8 = vld [vmem:[%s4623_s2 + $0xa0] sm:$0xff] }
 0x145   :  { %902 = vmatpush1.msra.mxu1 %v2385_v9  ;;  %v674_v9 = vld [vmem:[%s4623_s2 + $0x98] sm:$0xff] }
 0x146   :  { %903 = vmatprep.subr.mxu1 %v2384_v10  ;;  %v673_v10 = vld [vmem:[%s4623_s2 + $0x90] sm:$0xff] }
 0x147   :  { %904 = vmatpush1.msra.mxu1 %v2383_v11  ;;  %v672_v11 = vld [vmem:[%s4623_s2 + $0x88] sm:$0xff] }
 0x148   :  { %913 = vmatprep.subr.mxu1 %v2438_v12  ;;  %v671_v12 = vld [vmem:[%s4623_s2 + $0x80] sm:$0xff] }
 0x149   :  { %914 = vmatpush2.msra.mxu1 %v2437_v13  ;;  %v670_v13 = vld [vmem:[%s4623_s2 + $0x78] sm:$0xff] }
 0x14a   :  { %915 = vmatprep.subr.mxu1 %v2436_v14  ;;  %v669_v14 = vld [vmem:[%s4623_s2 + $0x70] sm:$0xff] }
 0x14b   :  { %916 = vmatpush2.msra.mxu1 %v2435_v15  ;;  %v668_v15 = vld [vmem:[%s4623_s2 + $0x68] sm:$0xff] }
 0x14c   :  { %917 = vmatprep.subr.mxu1 %v2434_v16  ;;  %v667_v16 = vld [vmem:[%s4623_s2 + $0x60] sm:$0xff] }
 0x14d   :  { %918 = vmatpush2.msra.mxu1 %v2433_v17  ;;  %v666_v17 = vld [vmem:[%s4623_s2 + $0x58] sm:$0xff] }
 0x14e   :  { %919 = vmatprep.subr.mxu1 %v2432_v18  ;;  %v665_v18 = vld [vmem:[%s4623_s2 + $0x50] sm:$0xff] }
 0x14f   :  { %920 = vmatpush2.msra.mxu1 %v2431_v19  ;;  %v664_v19 = vld [vmem:[%s4623_s2 + $0x48] sm:$0xff] }
 0x150   :  { %921 = vmatprep.subr.mxu1 %v2430_v20  ;;  %v663_v20 = vld [vmem:[%s4623_s2 + $0x40] sm:$0xff] }
 0x151   :  { %922 = vmatpush2.msra.mxu1 %v2429_v23  ;;  %v662_v23 = vld [vmem:[%s4623_s2 + $0x38] sm:$0xff] }
 0x152   :  { %923 = vmatprep.subr.mxu1 %v2428_v24  ;;  %v661_v24 = vld [vmem:[%s4623_s2 + $0x30] sm:$0xff] }
 0x153   :  { %924 = vmatpush2.msra.mxu1 %v2427_v27  ;;  %v660_v27 = vld [vmem:[%s4623_s2 + $0x28] sm:$0xff] }
 0x1e8   :  { %v495_v28 = vpop.f32.mrf.mxu1 }
 0x1e9   :  { %v499_v30 = vmul.f32 0.0025510204, %v495_v28  ;;  %v659_v28 = vld [vmem:[%s4623_s2 + $0x20] sm:$0xff] }
 0x1ea   :  { %v497_v31 = vpop.f32.mrf.mxu1 }
 0x1eb   :  { %v500_v32 = vmul.f32 %v499_v30, %v499_v30  ;;  %v657_v31 = vld [vmem:[%s4623_s2 + $0x10] sm:$0xff] }
 0x1ed   :  { %v502_v33 = vrot.slane %v500_v32, 7  ;;  %v656_v32 = vld [vmem:[%s4623_s2 + $0x8] sm:$0xff] }
 0x1ef   :  { %v504_v34 = vsub.f32 %v499_v30, %v502_v33  ;;  %v655_v33 = vld [vmem:[%s4623_s2] sm:$0xff] }
 0x1f1   :  { %v506_v40 = vadd.f32 1e-05, %v504_v34  ;;  %v710_v34 = vld [vmem:[%s4623_s2 + $0x1b8] sm:$0xff] }
 0x1f3   :  { %2687 = vrsqrt.f32 %v506_v40  ;;  %v709_v40 = vld [vmem:[%s4623_s2 + $0x1b0] sm:$0xff] }
 0x200   :  { %v2688_v48 = vpop.eup %2687 }
 0x201   :  { %v515_v49 = vrot.slane %v2688_v48, %v3487_v47  ;;  %v704_v48 = vld [vmem:[%s4623_s2 + $0x188] sm:$0xff] }
 0x203   :  { %v516_v50 = vcombine.high %v515_v49, %v515_v49  ;;  %v703_v49 = vld [vmem:[%s4623_s2 + $0x180] sm:$0xff] }
 0x205   :  { %v523_v52 = vrot.slane %v516_v50, %v3487_v47  ;;  %v702_v50 = vld [vmem:[%s4623_s2 + $0x178] sm:$0xff] }
 0x207   :  { %v525_v53 = vmul.f32 %v523_v52, %v505_v51  ;;  %v701_v51 = vld [vmem:[%s4623_s2 + $0x170] sm:$0xff]  ;;  %v700_v52 = vld [vmem:[%s4623_s2 + $0x168] sm:$0xff] }
 0x209   :  { %v527_v56 = vmul.f32 %v525_v53, %v499_v30  ;;  %v658_v30 = vld [vmem:[%s4623_s2 + $0x18] sm:$0xff] }
 0x20b   :  { %v528_v58 = vsub.f32 %v526_v55, %v527_v56  ;;  %v698_v55 = vld [vmem:[%s4623_s2 + $0x158] sm:$0xff] }
 0x20c   :  { %v2426_v56 = vld [vmem:[%s4623_s2 + $0x318] sm:$0xff] }
 0x20d   :  { %v533_v59 = vrot.slane %v528_v58, %v3498_v57  ;;  %925 = vmatprep.subr.mxu1 %v2426_v56  ;;  %v697_v58 = vld [vmem:[%s4623_s2 + $0x150] sm:$0xff] }
 0x20f   :  { %v535_v61 = vsel %vm395_vm3, %v525_v53, %v533_v59  ;;  %v699_v53 = vld [vmem:[%s4623_s2 + $0x160] sm:$0xff]  ;;  %v2425_v59 = vld [vmem:[%s4623_s2 + $0x310] sm:$0xff] }
 0x210   :  { %2378 = vmatmul.mubr.msk.f32.vlgmr.msra.gmra.mxu0 %vm540_vm4, %v535_v61  ;;  %926 = vmatpush2.msra.mxu1 %v2425_v59  ;;  %v2424_v61 = vld [vmem:[%s4623_s2 + $0x308] sm:$0xff] }
 0x211   :  { %724 = vmatpush1.msra.mxu0 %v685_v60  ;;  %v696_v60 = vld [vmem:[%s4623_s2 + $0x148] sm:$0xff]  ;;  %927 = vmatprep.subr.mxu1 %v2424_v61 }
 0x212   :  { %725 = vmatprep.subr.mxu0 %v684_v62  ;;  %v695_v62 = vld [vmem:[%s4623_s2 + $0x140] sm:$0xff] }
 0x213   :  { %726 = vmatpush1.msra.mxu0 %v683_v63  ;;  %v2423_v63 = vld [vmem:[%s4623_s2 + $0x300] sm:$0xff] }
 0x214   :  { %727 = vmatprep.subr.mxu0 %v682_v0  ;;  %928 = vmatpush2.msra.mxu1 %v2423_v63  ;;  %v694_v0 = vld [vmem:[%s4623_s2 + $0x138] sm:$0xff] }
 0x215   :  { %728 = vmatpush1.msra.mxu0 %v681_v1  ;;  %v2422_v1 = vld [vmem:[%s4623_s2 + $0x2f8] sm:$0xff] }
 0x216   :  { %729 = vmatprep.subr.mxu0 %v680_v2  ;;  %929 = vmatprep.subr.mxu1 %v2422_v1  ;;  %v693_v2 = vld [vmem:[%s4623_s2 + $0x130] sm:$0xff] }
 0x217   :  { %730 = vmatpush1.msra.mxu0 %v679_v3  ;;  %v2421_v3 = vld [vmem:[%s4623_s2 + $0x2f0] sm:$0xff] }
 0x218   :  { %731 = vmatprep.subr.mxu0 %v678_v4  ;;  %930 = vmatpush2.msra.mxu1 %v2421_v3  ;;  %v692_v4 = vld [vmem:[%s4623_s2 + $0x128] sm:$0xff] }
 0x219   :  { %732 = vmatpush1.msra.mxu0 %v677_v5  ;;  %v2420_v5 = vld [vmem:[%s4623_s2 + $0x2e8] sm:$0xff] }
 0x21a   :  { %733 = vmatprep.subr.mxu0 %v676_v7  ;;  %v691_v7 = vld [vmem:[%s4623_s2 + $0x120] sm:$0xff]  ;;  %931 = vmatprep.subr.mxu1 %v2420_v5 }
 0x21b   :  { %734 = vmatpush1.msra.mxu0 %v675_v8  ;;  %v2419_v8 = vld [vmem:[%s4623_s2 + $0x2e0] sm:$0xff] }
 0x21c   :  { %735 = vmatprep.subr.mxu0 %v674_v9  ;;  %v690_v9 = vld [vmem:[%s4623_s2 + $0x118] sm:$0xff]  ;;  %932 = vmatpush2.msra.mxu1 %v2419_v8  ;;  %v812_v8 = vld [vmem:[%s4624_s3] sm:$0xff] }
 0x21d   :  { %736 = vmatpush1.msra.mxu0 %v673_v10  ;;  %v2418_v10 = vld [vmem:[%s4623_s2 + $0x2d8] sm:$0xff] }
 0x21e   :  { %737 = vmatprep.subr.mxu0 %v672_v11  ;;  %v689_v11 = vld [vmem:[%s4623_s2 + $0x110] sm:$0xff]  ;;  %933 = vmatprep.subr.mxu1 %v2418_v10 }
 0x21f   :  { %738 = vmatpush1.msra.mxu0 %v671_v12  ;;  %v2417_v12 = vld [vmem:[%s4623_s2 + $0x2d0] sm:$0xff] }
 0x220   :  { %739 = vmatprep.subr.mxu0 %v670_v13  ;;  %v688_v13 = vld [vmem:[%s4623_s2 + $0x108] sm:$0xff]  ;;  %934 = vmatpush2.msra.mxu1 %v2417_v12  ;;  %v2489_v10 = vld [vmem:[%s4623_s2 + $0x470] sm:$0xff]  ;;  %v2487_v12 = vld [vmem:[%s4623_s2 + $0x460] sm:$0xff] }
 0x221   :  { %740 = vmatpush1.msra.mxu0 %v669_v14  ;;  %v2416_v14 = vld [vmem:[%s4623_s2 + $0x2c8] sm:$0xff] }
 0x222   :  { %741 = vmatprep.subr.mxu0 %v668_v15  ;;  %v687_v15 = vld [vmem:[%s4623_s2 + $0x100] sm:$0xff]  ;;  %935 = vmatprep.subr.mxu1 %v2416_v14  ;;  %v2444_v14 = vld [vmem:[%s4624_s3 + $0x28] sm:$0xff] }
 0x223   :  { %742 = vmatpush1.msra.mxu0 %v667_v16  ;;  %v2415_v16 = vld [vmem:[%s4623_s2 + $0x2c0] sm:$0xff] }
 0x224   :  { %743 = vmatprep.subr.mxu0 %v666_v17  ;;  %936 = vmatpush2.msra.mxu1 %v2415_v16  ;;  %v2485_v16 = vld [vmem:[%s4623_s2 + $0x450] sm:$0xff] }
 0x225   :  { %744 = vmatpush1.msra.mxu0 %v665_v18  ;;  %v3705_v18 = vsub.s32 1, %v3484_v46 }
 0x226   :  { %745 = vmatprep.subr.mxu0 %v664_v19 }
 0x227   :  { %746 = vmatpush1.msra.mxu0 %v663_v20 }
 0x228   :  { %747 = vmatprep.subr.mxu0 %v662_v23 }
 0x229   :  { %748 = vmatpush1.msra.mxu0 %v661_v24 }
 0x22a   :  { %749 = vmatprep.subr.mxu0 %v660_v27 }
 0x22b   :  { %750 = vmatpush1.msra.mxu0 %v659_v28 }
 0x22c   :  { %751 = vmatprep.subr.mxu0 %v658_v30 }
 0x22d   :  { %752 = vmatpush1.msra.mxu0 %v657_v31 }
 0x22e   :  { %753 = vmatprep.subr.mxu0 %v656_v32 }
 0x22f   :  { %754 = vmatpush1.msra.mxu0 %v655_v33 }
 0x230   :  { %763 = vmatprep.subr.mxu0 %v710_v34 }
 0x231   :  { %764 = vmatpush2.msra.mxu0 %v709_v40 }
 0x232   :  { %765 = vmatprep.subr.mxu0 %v708_v41 }
 0x233   :  { %766 = vmatpush2.msra.mxu0 %v707_v42 }
 0x234   :  { %767 = vmatprep.subr.mxu0 %v706_v43 }
 0x235   :  { %768 = vmatpush2.msra.mxu0 %v705_v45 }
 0x236   :  { %769 = vmatprep.subr.mxu0 %v704_v48 }
 0x237   :  { %770 = vmatpush2.msra.mxu0 %v703_v49 }
 0x238   :  { %771 = vmatprep.subr.mxu0 %v702_v50 }
 0x239   :  { %772 = vmatpush2.msra.mxu0 %v701_v51 }
 0x23a   :  { %773 = vmatprep.subr.mxu0 %v700_v52 }
 0x23b   :  { %774 = vmatpush2.msra.mxu0 %v699_v53 }
 0x23c   :  { %775 = vmatprep.subr.mxu0 %v698_v55 }
 0x23d   :  { %776 = vmatpush2.msra.mxu0 %v697_v58 }
 0x23e   :  { %777 = vmatprep.subr.mxu0 %v696_v60 }
 0x23f   :  { %778 = vmatpush2.msra.mxu0 %v695_v62 }
 0x240   :  { %779 = vmatprep.subr.mxu0 %v694_v0 }
 0x241   :  { %780 = vmatpush2.msra.mxu0 %v693_v2 }
 0x242   :  { %781 = vmatprep.subr.mxu0 %v692_v4 }
 0x243   :  { %782 = vmatpush2.msra.mxu0 %v691_v7  ;;  %v2443_v7 = vld [vmem:[%s4624_s3 + $0x20] sm:$0xff] }
 0x244   :  { %783 = vmatprep.subr.mxu0 %v690_v9  ;;  %v2490_v9 = vld [vmem:[%s4623_s2 + $0x478] sm:$0xff] }
 0x245   :  { %784 = vmatpush2.msra.mxu0 %v689_v11  ;;  %v2488_v11 = vld [vmem:[%s4623_s2 + $0x468] sm:$0xff] }
 0x246   :  { %785 = vmatprep.subr.mxu0 %v688_v13  ;;  %v813_v13 = vld [vmem:[%s4624_s3 + $0x8] sm:$0xff] }
 0x247   :  { %786 = vmatpush2.msra.mxu0 %v687_v15  ;;  %v2486_v15 = vld [vmem:[%s4623_s2 + $0x458] sm:$0xff] }
 0x2d0   :  { %v610_v17 = vpop.f32.mrf.mxu0 }
 0x2d1   :  { %v618_v19 = vrot.slane %v610_v17, %v3498_v57  ;;  %v634_v27 = vrot.slane %v610_v17, %v3705_v18  ;;  %v2484_v17 = vld [vmem:[%s4623_s2 + $0x448] sm:$0xff] }
 0x2d2   :  { %v612_v20 = vpop.f32.mrf.mxu0 }
 0x2d3   :  { %v623_v23 = vmul.f32 %v618_v19, %v3278_v26  ;;  %v622_v24 = vrot.slane %v612_v20, %v3498_v57  ;;  %v638_v31 = vrot.slane %v612_v20, %v3705_v18  ;;  %v625_v33 = vmul.f32 %v618_v19, %v3274_v22  ;;  %v814_v20 = vld [vmem:[%s4624_s3 + $0x10] sm:$0xff] }
 0x2d4   :  { %v627_v43 = vmul.f32 %v618_v19, %v3282_v29 }
 0x2d5   :  { %v624_v28 = vmul.f32 %v622_v24, %v3272_v21  ;;  %v626_v30 = vmul.f32 %v622_v24, %v3276_v25  ;;  %v639_v32 = vadd.f32 %v634_v27, %v623_v23  ;;  %v628_v46 = vmul.f32 %v622_v24, %v3290_v35  ;;  %v2445_v23 = vld [vmem:[%s4624_s3 + $0x30] sm:$0xff] }
 0x2d6   :  { %v641_v42 = vadd.f32 %v634_v27, %v625_v33  ;;  %v630_v21 = vmul.f32 %v622_v24, %v3314_v54  ;;  %v643_v35 = vadd.f32 %v634_v27, %v627_v43  ;;  %v629_v54 = vmul.f32 %v618_v19, %v3305_v44  ;;  %v2483_v19 = vld [vmem:[%s4623_s2 + $0x440] sm:$0xff]  ;;  %v2482_v24 = vld [vmem:[%s4623_s2 + $0x438] sm:$0xff]  ;;  %v2473_v43 = vld [vmem:[%s4623_s2 + $0x3f0] sm:$0xff] }
 0x2d7   :  { %v640_v34 = vadd.f32 %v638_v31, %v624_v28  ;;  %v642_v40 = vadd.f32 %v638_v31, %v626_v30  ;;  %v3718_v26 = vmax.f32 %v639_v32, 0.0  ;;  %v644_v25 = vadd.f32 %v638_v31, %v628_v46  ;;  %v2480_v28 = vld [vmem:[%s4623_s2 + $0x428] sm:$0xff]  ;;  %v2479_v30 = vld [vmem:[%s4623_s2 + $0x420] sm:$0xff]  ;;  %v2446_v32 = vld [vmem:[%s4624_s3 + $0x38] sm:$0xf] }
 0x2d8   :  { %v3734_v29 = vmax.f32 %v641_v42, 0.0  ;;  %v646_v48 = vadd.f32 %v638_v31, %v630_v21  ;;  %v3745_v49 = vmax.f32 %v643_v35, 0.0  ;;  %v645_v50 = vadd.f32 %v634_v27, %v629_v54  ;;  %v2481_v27 = vld [vmem:[%s4623_s2 + $0x430] sm:$0xff]  ;;  %v815_v31 = vld [vmem:[%s4624_s3 + $0x18] sm:$0xf]  ;;  %v2472_v21 = vld [vmem:[%s4623_s2 + $0x3e8] sm:$0xff] }
 0x2d9   :  { %v3716_v41 = vmax.f32 %v640_v34, 0.0  ;;  %v3726_v22 = vmax.f32 %v642_v40, 0.0  ;;  %v3737_v45 = vmax.f32 %v644_v25, 0.0  ;;  %v2478_v33 = vld [vmem:[%s4623_s2 + $0x418] sm:$0xff]  ;;  %v2477_v46 = vld [vmem:[%s4623_s2 + $0x410] sm:$0xff]  ;;  %v2476_v34 = vld [vmem:[%s4623_s2 + $0x408] sm:$0xff] }
 0x2da   :  { %v3747_v51 = vmax.f32 %v646_v48, 0.0  ;;  %v3755_v44 = vmax.f32 %v645_v50, 0.0  ;;  %v2475_v40 = vld [vmem:[%s4623_s2 + $0x400] sm:$0xff]  ;;  %v2474_v42 = vld [vmem:[%s4623_s2 + $0x3f8] sm:$0xff]  ;;  %v2469_v35 = vld [vmem:[%s4623_s2 + $0x3d0] sm:$0xff] }
 0x2db   :  { %2379 = vmatprep.mubr.msk.f32.mxu0 %vm349_vm0, %v3716_v41  ;;  %2439 = vmatprep.mubr.msk.f32.mxu1 %vm349_vm0, %v3716_v41  ;;  %v2470_v25 = vld [vmem:[%s4623_s2 + $0x3d8] sm:$0xff]  ;;  %v2468_v54 = vld [vmem:[%s4623_s2 + $0x3c8] sm:$0xff]  ;;  %v2467_v48 = vld [vmem:[%s4623_s2 + $0x3c0] sm:$0xff] }
 0x2dc   :  { %788 = vmatmul.mubr.f32.vlgmr.msra.gmra.mxu0 %v3718_v26  ;;  %938 = vmatmul.mubr.f32.vlgmr.msra.gmra.mxu1 %v3718_v26  ;;  %v2466_v50 = vld [vmem:[%s4623_s2 + $0x3b8] sm:$0xff] }
 0x2dd   :  { %2380 = vmatprep.mubr.msk.f32.mxu0 %vm349_vm0, %v3726_v22  ;;  %2440 = vmatprep.mubr.msk.f32.mxu1 %vm349_vm0, %v3726_v22 }
 0x2e0   :  { %794 = vmatmul.mubr.f32.gmra.mxu0 %v3734_v29  ;;  %944 = vmatmul.mubr.f32.gmra.mxu1 %v3734_v29 }
 0x2e1   :  { %2381 = vmatprep.mubr.msk.f32.mxu0 %vm349_vm0, %v3737_v45  ;;  %2441 = vmatprep.mubr.msk.f32.mxu1 %vm349_vm0, %v3737_v45 }
 0x2e4   :  { %800 = vmatmul.mubr.f32.gmra.mxu0 %v3745_v49  ;;  %950 = vmatmul.mubr.f32.gmra.mxu1 %v3745_v49 }
 0x2e5   :  { %2382 = vmatprep.mubr.msk.f32.mxu0 %vm349_vm0, %v3747_v51  ;;  %2442 = vmatprep.mubr.msk.f32.mxu1 %vm349_vm0, %v3747_v51 }
 0x2e8   :  { %806 = vmatmul.mubr.f32.gmra.mxu0 %v3755_v44  ;;  %956 = vmatmul.mubr.f32.gmra.mxu1 %v3755_v44 }
 0x2e9   :  { %1050 = vmatprep.mubr.f32.mxu0 %v2743_v6  ;;  %1157 = vmatprep.mubr.f32.mxu1 %v2743_v6 }
 0x39c   :  { %v789_v52 = vpop.f32.mrf.mxu0  ;;  %v939_v53 = vpop.f32.mrf.mxu1 }
 0x39e   :  { %v791_v55 = vpop.f32.mrf.mxu0  ;;  %v941_v56 = vpop.f32.mrf.mxu1 }
 0x3a0   :  { %v795_v58 = vpop.f32.mrf.mxu0  ;;  %v945_v59 = vpop.f32.mrf.mxu1 }
 0x3a2   :  { %v797_v60 = vpop.f32.mrf.mxu0  ;;  %v947_v61 = vpop.f32.mrf.mxu1 }
 0x3a4   :  { %v801_v62 = vpop.f32.mrf.mxu0  ;;  %v951_v63 = vpop.f32.mrf.mxu1 }
 0x3a6   :  { %v803_v0 = vpop.f32.mrf.mxu0  ;;  %v953_v1 = vpop.f32.mrf.mxu1 }
 0x3a8   :  { %v807_v2 = vpop.f32.mrf.mxu0  ;;  %v957_v3 = vpop.f32.mrf.mxu1 }
 0x3aa   :  { %v809_v4 = vpop.f32.mrf.mxu0  ;;  %v959_v5 = vpop.f32.mrf.mxu1 }
 0x3ab   :  { %2447 = vmatprep.subr.msk.mxu0 %vm340_vm1, %v959_v5  ;;  %2453 = vmatprep.subr.msk.mxu1 %vm340_vm1, %v809_v4  ;;  %v2507_v4 = vld [vmem:[%s4623_s2 + $0x500] sm:$0xff]  ;;  %v2506_v5 = vld [vmem:[%s4623_s2 + $0x4f8] sm:$0xff] }
 0x3ac   :  { %2448 = vmatpush1.msk.msra.mxu0 %vm340_vm1, %v957_v3  ;;  %2454 = vmatpush1.msk.msra.mxu1 %vm340_vm1, %v807_v2  ;;  %v2509_v2 = vld [vmem:[%s4623_s2 + $0x510] sm:$0xff]  ;;  %v2508_v3 = vld [vmem:[%s4623_s2 + $0x508] sm:$0xff] }
 0x3ad   :  { %1012 = vmatprep.subr.mxu0 %v953_v1  ;;  %1119 = vmatprep.subr.mxu1 %v803_v0  ;;  %v2511_v0 = vld [vmem:[%s4623_s2 + $0x520] sm:$0xff]  ;;  %v2510_v1 = vld [vmem:[%s4623_s2 + $0x518] sm:$0xff] }
 0x3ae   :  { %1013 = vmatpush1.msra.mxu0 %v951_v63  ;;  %1120 = vmatpush1.msra.mxu1 %v801_v62  ;;  %v2513_v62 = vld [vmem:[%s4623_s2 + $0x530] sm:$0xff]  ;;  %v2512_v63 = vld [vmem:[%s4623_s2 + $0x528] sm:$0xff] }
 0x3af   :  { %1014 = vmatprep.subr.mxu0 %v947_v61  ;;  %1121 = vmatprep.subr.mxu1 %v797_v60  ;;  %v2459_v60 = vld [vmem:[%s4623_s2 + $0x380] sm:$0xff]  ;;  %v2514_v61 = vld [vmem:[%s4623_s2 + $0x538] sm:$0xff] }
 0x3b0   :  { %1015 = vmatpush1.msra.mxu0 %v945_v59  ;;  %1122 = vmatpush1.msra.mxu1 %v795_v58  ;;  %v2461_v58 = vld [vmem:[%s4623_s2 + $0x390] sm:$0xff]  ;;  %v2460_v59 = vld [vmem:[%s4623_s2 + $0x388] sm:$0xff] }
 0x3b1   :  { %1016 = vmatprep.subr.mxu0 %v941_v56  ;;  %1123 = vmatprep.subr.mxu1 %v791_v55  ;;  %v2463_v55 = vld [vmem:[%s4623_s2 + $0x3a0] sm:$0xff]  ;;  %v2462_v56 = vld [vmem:[%s4623_s2 + $0x398] sm:$0xff] }
 0x3b2   :  { %1017 = vmatpush1.msra.mxu0 %v939_v53  ;;  %1124 = vmatpush1.msra.mxu1 %v789_v52  ;;  %v2465_v52 = vld [vmem:[%s4623_s2 + $0x3b0] sm:$0xff]  ;;  %v2464_v53 = vld [vmem:[%s4623_s2 + $0x3a8] sm:$0xff] }
 0x3b3   :  { %2449 = vmatmul.mubr.msk.f32.vlgmr.msra.gmra.mxu0 %vm967_vm5, %v2443_v7  ;;  %2455 = vmatmul.mubr.msk.f32.vlgmr.msra.gmra.mxu1 %vm967_vm5, %v812_v8  ;;  %v2505_v7 = vld [vmem:[%s4623_s2 + $0x4f0] sm:$0xff]  ;;  %v2504_v8 = vld [vmem:[%s4623_s2 + $0x4e8] sm:$0xff] }
 0x3b4   :  { %1239 = vmatprep.subr.mxu0 %v2490_v9  ;;  %1056 = vmatprep.mubr.f32.mxu0 %v2743_v6  ;;  %v2503_v9 = vld [vmem:[%s4623_s2 + $0x4e0] sm:$0xff] }
 0x3b5   :  { %1240 = vmatpush1.msra.mxu0 %v2489_v10  ;;  %1163 = vmatprep.mubr.f32.mxu1 %v2743_v6  ;;  %v2502_v10 = vld [vmem:[%s4623_s2 + $0x4d8] sm:$0xff] }
 0x3b6   :  { %1241 = vmatprep.subr.mxu0 %v2488_v11  ;;  %v2501_v11 = vld [vmem:[%s4623_s2 + $0x4d0] sm:$0xff] }
 0x3b7   :  { %1242 = vmatpush1.msra.mxu0 %v2487_v12  ;;  %2456 = vmatmul.mubr.msk.f32.gmra.mxu1 %vm967_vm5, %v813_v13  ;;  %v2500_v12 = vld [vmem:[%s4623_s2 + $0x4c8] sm:$0xff]  ;;  %v2499_v13 = vld [vmem:[%s4623_s2 + $0x4c0] sm:$0xff] }
 0x3b8   :  { %2450 = vmatmul.mubr.msk.f32.gmra.mxu0 %vm967_vm5, %v2444_v14  ;;  %1243 = vmatprep.subr.mxu0 %v2486_v15  ;;  %v2498_v14 = vld [vmem:[%s4623_s2 + $0x4b8] sm:$0xff]  ;;  %v2497_v15 = vld [vmem:[%s4623_s2 + $0x4b0] sm:$0xff] }
 0x3b9   :  { %1244 = vmatpush1.msra.mxu0 %v2485_v16  ;;  %1062 = vmatprep.mubr.f32.mxu0 %v2743_v6  ;;  %v2496_v16 = vld [vmem:[%s4623_s2 + $0x4a8] sm:$0xff] }
 0x3ba   :  { %1245 = vmatprep.subr.mxu0 %v2484_v17  ;;  %1169 = vmatprep.mubr.f32.mxu1 %v2743_v6  ;;  %v2495_v17 = vld [vmem:[%s4623_s2 + $0x4a0] sm:$0xff] }
 0x3bb   :  { %1246 = vmatpush1.msra.mxu0 %v2483_v19  ;;  %2457 = vmatmul.mubr.msk.f32.gmra.mxu1 %vm967_vm5, %v814_v20  ;;  %v2494_v19 = vld [vmem:[%s4623_s2 + $0x498] sm:$0xff]  ;;  %v2493_v20 = vld [vmem:[%s4623_s2 + $0x490] sm:$0xff] }
 0x3bc   :  { %2451 = vmatmul.mubr.msk.f32.gmra.mxu0 %vm967_vm5, %v2445_v23  ;;  %1247 = vmatprep.subr.mxu0 %v2482_v24  ;;  %v2492_v23 = vld [vmem:[%s4623_s2 + $0x488] sm:$0xff]  ;;  %v2491_v24 = vld [vmem:[%s4623_s2 + $0x480] sm:$0xff] }
 0x3bd   :  { %1248 = vmatpush1.msra.mxu0 %v2481_v27  ;;  %1068 = vmatprep.mubr.f32.mxu0 %v2743_v6 }
 0x3be   :  { %1249 = vmatprep.subr.mxu0 %v2480_v28  ;;  %1175 = vmatprep.mubr.f32.mxu1 %v2743_v6 }
 0x3bf   :  { %1250 = vmatpush1.msra.mxu0 %v2479_v30  ;;  %2458 = vmatmul.mubr.msk.f32.gmra.mxu1 %vm967_vm5, %v815_v31 }
 0x3c0   :  { %2452 = vmatmul.mubr.msk.f32.gmra.mxu0 %vm967_vm5, %v2446_v32  ;;  %1251 = vmatprep.subr.mxu0 %v2478_v33  ;;  %v2519_v33 = vld [vmem:[%s4624_s3 + $0x40] sm:$0xff] }
 0x3c1   :  { %1252 = vmatpush1.msra.mxu0 %v2477_v46  ;;  %2515 = vmatprep.mubr.msk.f32.mxu0 %vm349_vm0, %v3716_v41  ;;  %v2471_v41 = vld [vmem:[%s4623_s2 + $0x3e0] sm:$0xff]  ;;  %v2520_v46 = vld [vmem:[%s4624_s3 + $0x48] sm:$0xff] }
 0x3c2   :  { %1253 = vmatprep.subr.mxu0 %v2476_v34  ;;  %1415 = vmatprep.mubr.f32.mxu1 %v2743_v6  ;;  %v2693_v34 = vld [vmem:[%s4627_s6 + $0x78] sm:$0xff] }
 0x3c3   :  { %1254 = vmatpush1.msra.mxu0 %v2475_v40  ;;  %v2694_v40 = vld [vmem:[%s4627_s6 + $0x70] sm:$0xff] }
 0x3c4   :  { %1255 = vmatprep.subr.mxu0 %v2474_v42  ;;  %v2521_v42 = vld [vmem:[%s4624_s3 + $0x50] sm:$0xff] }
 0x3c5   :  { %1256 = vmatpush1.msra.mxu0 %v2473_v43  ;;  %v2695_v43 = vld [vmem:[%s4627_s6 + $0x68] sm:$0xff] }
 0x3c6   :  { %1257 = vmatprep.subr.mxu0 %v2472_v21  ;;  %v2696_v21 = vld [vmem:[%s4627_s6 + $0x60] sm:$0xff] }
 0x3c7   :  { %1258 = vmatpush1.msra.mxu0 %v2471_v41  ;;  %v2522_v41 = vld [vmem:[%s4624_s3 + $0x58] sm:$0xf] }
 0x3c8   :  { %1259 = vmatprep.subr.mxu0 %v2470_v25  ;;  %v2697_v25 = vld [vmem:[%s4627_s6 + $0x58] sm:$0xff] }
 0x3c9   :  { %1260 = vmatpush1.msra.mxu0 %v2469_v35  ;;  %v2698_v35 = vld [vmem:[%s4627_s6 + $0x50] sm:$0xff] }
 0x3ca   :  { %1261 = vmatprep.subr.mxu0 %v2468_v54  ;;  %v2699_v54 = vld [vmem:[%s4627_s6 + $0x48] sm:$0xff] }
 0x3cb   :  { %1262 = vmatpush1.msra.mxu0 %v2467_v48  ;;  %v2700_v48 = vld [vmem:[%s4627_s6 + $0x40] sm:$0xff] }
 0x3cc   :  { %1263 = vmatprep.subr.mxu0 %v2466_v50  ;;  %v2701_v50 = vld [vmem:[%s4627_s6 + $0x38] sm:$0xff] }
 0x3cd   :  { %1264 = vmatpush1.msra.mxu0 %v2465_v52  ;;  %v2702_v52 = vld [vmem:[%s4627_s6 + $0x30] sm:$0xff] }
 0x3ce   :  { %1265 = vmatprep.subr.mxu0 %v2464_v53  ;;  %v2703_v53 = vld [vmem:[%s4627_s6 + $0x28] sm:$0xff] }
 0x3cf   :  { %1266 = vmatpush1.msra.mxu0 %v2463_v55  ;;  %v2704_v55 = vld [vmem:[%s4627_s6 + $0x20] sm:$0xff] }
 0x3d0   :  { %1267 = vmatprep.subr.mxu0 %v2462_v56  ;;  %v2705_v56 = vld [vmem:[%s4627_s6 + $0x18] sm:$0xff] }
 0x3d1   :  { %1268 = vmatpush1.msra.mxu0 %v2461_v58  ;;  %v2706_v58 = vld [vmem:[%s4627_s6 + $0x10] sm:$0xff] }
 0x3d2   :  { %1269 = vmatprep.subr.mxu0 %v2460_v59  ;;  %v2707_v59 = vld [vmem:[%s4627_s6 + $0x8] sm:$0xff] }
 0x3d3   :  { %1270 = vmatpush1.msra.mxu0 %v2459_v60  ;;  %v2708_v60 = vld [vmem:[%s4627_s6] sm:$0xff] }
 0x3d4   :  { %1279 = vmatprep.subr.mxu0 %v2514_v61  ;;  %v2709_v61 = vld [vmem:[%s4627_s6 + $0xd8] sm:$0xff] }
 0x3d5   :  { %1280 = vmatpush2.msra.mxu0 %v2513_v62  ;;  %v2710_v62 = vld [vmem:[%s4627_s6 + $0xd0] sm:$0xff] }
 0x3d6   :  { %1281 = vmatprep.subr.mxu0 %v2512_v63  ;;  %v2711_v63 = vld [vmem:[%s4627_s6 + $0xc8] sm:$0xff] }
 0x3d7   :  { %1282 = vmatpush2.msra.mxu0 %v2511_v0  ;;  %v2712_v0 = vld [vmem:[%s4627_s6 + $0xc0] sm:$0xff] }
 0x3d8   :  { %1283 = vmatprep.subr.mxu0 %v2510_v1  ;;  %v2713_v1 = vld [vmem:[%s4627_s6 + $0xb8] sm:$0xff] }
 0x3d9   :  { %1284 = vmatpush2.msra.mxu0 %v2509_v2  ;;  %v2714_v2 = vld [vmem:[%s4627_s6 + $0xb0] sm:$0xff] }
 0x3da   :  { %1285 = vmatprep.subr.mxu0 %v2508_v3  ;;  %v2715_v3 = vld [vmem:[%s4627_s6 + $0xa8] sm:$0xff] }
 0x3db   :  { %1286 = vmatpush2.msra.mxu0 %v2507_v4  ;;  %v2716_v4 = vld [vmem:[%s4627_s6 + $0xa0] sm:$0xff] }
 0x3dc   :  { %1287 = vmatprep.subr.mxu0 %v2506_v5  ;;  %v2717_v5 = vld [vmem:[%s4627_s6 + $0x98] sm:$0xff] }
 0x3dd   :  { %1288 = vmatpush2.msra.mxu0 %v2505_v7  ;;  %v2718_v7 = vld [vmem:[%s4627_s6 + $0x90] sm:$0xff] }
 0x3de   :  { %1289 = vmatprep.subr.mxu0 %v2504_v8  ;;  %v2719_v8 = vld [vmem:[%s4627_s6 + $0x88] sm:$0xff] }
 0x3df   :  { %1290 = vmatpush2.msra.mxu0 %v2503_v9  ;;  %v2720_v9 = vld [vmem:[%s4627_s6 + $0x80] sm:$0xff] }
 0x3e0   :  { %1291 = vmatprep.subr.mxu0 %v2502_v10 }
 0x3e1   :  { %1292 = vmatpush2.msra.mxu0 %v2501_v11 }
 0x3e2   :  { %1293 = vmatprep.subr.mxu0 %v2500_v12 }
 0x3e3   :  { %1294 = vmatpush2.msra.mxu0 %v2499_v13 }
 0x3e4   :  { %1295 = vmatprep.subr.mxu0 %v2498_v14 }
 0x3e5   :  { %1296 = vmatpush2.msra.mxu0 %v2497_v15 }
 0x3e6   :  { %1297 = vmatprep.subr.mxu0 %v2496_v16 }
 0x3e7   :  { %1298 = vmatpush2.msra.mxu0 %v2495_v17 }
 0x3e8   :  { %1299 = vmatprep.subr.mxu0 %v2494_v19 }
 0x3e9   :  { %1300 = vmatpush2.msra.mxu0 %v2493_v20 }
 0x3ea   :  { %1301 = vmatprep.subr.mxu0 %v2492_v23 }
 0x3eb   :  { %1302 = vmatpush2.msra.mxu0 %v2491_v24 }
 0x3ec   :  { %1304 = vmatmul.mubr.f32.vlgmr.msra.gmra.mxu0 %v3718_v26  ;;  %1645 = vmatprep.subr.mxu0 %v3328_v36 }
 0x3ed   :  { %2516 = vmatprep.mubr.msk.f32.mxu0 %vm349_vm0, %v3726_v22  ;;  %1646 = vmatpush1.msra.mxu0 %v3334_v37 }
 0x3ee   :  { %1647 = vmatprep.subr.mxu0 %v3340_v38 }
 0x3ef   :  { %1648 = vmatpush1.msra.mxu0 %v3345_v39 }
 0x3f0   :  { %1310 = vmatmul.mubr.f32.gmra.mxu0 %v3734_v29  ;;  %1768 = vmatprep.subr.mxu0 %v2743_v6 }
 0x3f1   :  { %2517 = vmatprep.mubr.msk.f32.mxu0 %vm349_vm0, %v3737_v45 }
 0x3f4   :  { %1316 = vmatmul.mubr.f32.gmra.mxu0 %v3745_v49 }
 0x3f5   :  { %2518 = vmatprep.mubr.msk.f32.mxu0 %vm349_vm0, %v3747_v51 }
 0x3f8   :  { %1322 = vmatmul.mubr.f32.gmra.mxu0 %v3755_v44 }
 0x3f9   :  { %1681 = vmatprep.mubr.f32.mxu0 %v2743_v6 }
 0x473   :  { %v3990_v36 = vpop.f32.mrf.mxu0  ;;  %v1159_v10 = vpop.f32.mrf.mxu1 }
 0x475   :  { %v3992_v37 = vpop.f32.mrf.mxu0  ;;  %v1161_v11 = vpop.f32.mrf.mxu1 }
 0x476   :  { %v1162_v23 = vadd.f32 %v1161_v11, %v3992_v37 }
 0x477   :  { %v1165_v12 = vpop.f32.mrf.mxu1 }
 0x478   :  { %v3994_v38 = vpop.f32.mrf.mxu0 }
 0x479   :  { %v1167_v13 = vpop.f32.mrf.mxu1  ;;  %v1166_v24 = vadd.f32 %v1165_v12, %v3994_v38 }
 0x47a   :  { %v3996_v39 = vpop.f32.mrf.mxu0 }
 0x47b   :  { %v1171_v14 = vpop.f32.mrf.mxu1 }
 0x47c   :  { %v3998_v26 = vpop.f32.mrf.mxu0 }
 0x47d   :  { %v1173_v15 = vpop.f32.mrf.mxu1 }
 0x47e   :  { %v4000_v22 = vpop.f32.mrf.mxu0 }
 0x47f   :  { %v1177_v16 = vpop.f32.mrf.mxu1  ;;  %v1174_v37 = vadd.f32 %v1173_v15, %v4000_v22 }
 0x480   :  { %v4002_v29 = vpop.f32.mrf.mxu0 }
 0x481   :  { %v1179_v17 = vpop.f32.mrf.mxu1 }
 0x482   :  { %v4004_v45 = vpop.f32.mrf.mxu0 }
 0x4ac   :  { %v1305_v49 = vpop.f32.mrf.mxu0 }
 0x4ae   :  { %v1307_v51 = vpop.f32.mrf.mxu0 }
 0x4b0   :  { %v1311_v44 = vpop.f32.mrf.mxu0 }
 0x4b2   :  { %v1313_v27 = vpop.f32.mrf.mxu0 }
 0x4b4   :  { %v1317_v28 = vpop.f32.mrf.mxu0 }
 0x4b6   :  { %v1319_v30 = vpop.f32.mrf.mxu0 }
 0x4b8   :  { %v1323_v31 = vpop.f32.mrf.mxu0 }
 0x4ba   :  { %v1325_v32 = vpop.f32.mrf.mxu0 }
 0x4bb   :  { %2523 = vmatprep.subr.msk.mxu1 %vm340_vm1, %v1325_v32 }
 0x4bc   :  { %2524 = vmatpush1.msk.msra.mxu1 %vm340_vm1, %v1323_v31  ;;  %v1172_v31 = vadd.f32 %v1171_v14, %v3998_v26  ;;  %v1178_v26 = vadd.f32 %v1177_v16, %v4002_v29 }
 0x4bd   :  { %1377 = vmatprep.subr.mxu1 %v1319_v30 }
 0x4be   :  { %1378 = vmatpush1.msra.mxu1 %v1317_v28 }
 0x4bf   :  { %1379 = vmatprep.subr.mxu1 %v1313_v27 }
 0x4c0   :  { %1380 = vmatpush1.msra.mxu1 %v1311_v44  ;;  %v1160_v44 = vadd.f32 %v1159_v10, %v3990_v36 }
 0x4c1   :  { %1381 = vmatprep.subr.mxu1 %v1307_v51  ;;  %v1168_v51 = vadd.f32 %v1167_v13, %v3996_v39 }
 0x4c2   :  { %1382 = vmatpush1.msra.mxu1 %v1305_v49 }
 0x4c3   :  { %2525 = vmatmul.mubr.msk.f32.vlgmr.msra.gmra.mxu1 %vm967_vm5, %v2519_v33  ;;  %1507 = vmatprep.subr.mxu1 %v2743_v6 }
 0x4c4   :  { %1421 = vmatprep.mubr.f32.mxu1 %v2743_v6  ;;  %1508 = vmatpush1.msra.mxu1 %v2693_v34 }
 0x4c5   :  { %1509 = vmatprep.subr.mxu1 %v2743_v6 }
 0x4c6   :  { %1510 = vmatpush1.msra.mxu1 %v2694_v40 }
 0x4c7   :  { %2526 = vmatmul.mubr.msk.f32.gmra.mxu1 %vm967_vm5, %v2520_v46  ;;  %1511 = vmatprep.subr.mxu1 %v2743_v6 }
 0x4c8   :  { %1427 = vmatprep.mubr.f32.mxu1 %v2743_v6  ;;  %1512 = vmatpush1.msra.mxu1 %v2695_v43 }
 0x4c9   :  { %1513 = vmatprep.subr.mxu1 %v2743_v6 }
 0x4ca   :  { %1514 = vmatpush1.msra.mxu1 %v2696_v21 }
 0x4cb   :  { %2527 = vmatmul.mubr.msk.f32.gmra.mxu1 %vm967_vm5, %v2521_v42  ;;  %1515 = vmatprep.subr.mxu1 %v2743_v6  ;;  %v1180_v42 = vadd.f32 %v1179_v17, %v4004_v45 }
 0x4cc   :  { %1433 = vmatprep.mubr.f32.mxu1 %v2743_v6  ;;  %1516 = vmatpush1.msra.mxu1 %v2697_v25 }
 0x4cd   :  { %1517 = vmatprep.subr.mxu1 %v2743_v6 }
 0x4ce   :  { %1518 = vmatpush1.msra.mxu1 %v2698_v35 }
 0x4cf   :  { %2528 = vmatmul.mubr.msk.f32.gmra.mxu1 %vm967_vm5, %v2522_v41  ;;  %1519 = vmatprep.subr.mxu1 %v2743_v6 }
 0x4d0   :  { %1520 = vmatpush1.msra.mxu1 %v2699_v54 }
 0x4d1   :  { %1521 = vmatprep.subr.mxu1 %v2743_v6 }
 0x4d2   :  { %1522 = vmatpush1.msra.mxu1 %v2700_v48 }
 0x4d3   :  { %1523 = vmatprep.subr.mxu1 %v2743_v6 }
 0x4d4   :  { %1524 = vmatpush1.msra.mxu1 %v2701_v50 }
 0x4d5   :  { %1525 = vmatprep.subr.mxu1 %v2743_v6 }
 0x4d6   :  { %1526 = vmatpush1.msra.mxu1 %v2702_v52 }
 0x4d7   :  { %1527 = vmatprep.subr.mxu1 %v2743_v6 }
 0x4d8   :  { %1528 = vmatpush1.msra.mxu1 %v2703_v53 }
 0x4d9   :  { %1529 = vmatprep.subr.mxu1 %v2743_v6 }
 0x4da   :  { %1530 = vmatpush1.msra.mxu1 %v2704_v55 }
 0x4db   :  { %1531 = vmatprep.subr.mxu1 %v2743_v6 }
 0x4dc   :  { %1532 = vmatpush1.msra.mxu1 %v2705_v56 }
 0x4dd   :  { %1533 = vmatprep.subr.mxu1 %v2743_v6 }
 0x4de   :  { %1534 = vmatpush1.msra.mxu1 %v2706_v58 }
 0x4df   :  { %1535 = vmatprep.subr.mxu1 %v2743_v6 }
 0x4e0   :  { %1536 = vmatpush1.msra.mxu1 %v2707_v59 }
 0x4e1   :  { %1537 = vmatprep.subr.mxu1 %v2743_v6 }
 0x4e2   :  { %1538 = vmatpush1.msra.mxu1 %v2708_v60 }
 0x4e3   :  { %1547 = vmatprep.subr.mxu1 %v2743_v6 }
 0x4e4   :  { %1548 = vmatpush2.msra.mxu1 %v2709_v61 }
 0x4e5   :  { %1549 = vmatprep.subr.mxu1 %v2743_v6 }
 0x4e6   :  { %1550 = vmatpush2.msra.mxu1 %v2710_v62 }
 0x4e7   :  { %1551 = vmatprep.subr.mxu1 %v2743_v6 }
 0x4e8   :  { %1552 = vmatpush2.msra.mxu1 %v2711_v63 }
 0x4e9   :  { %1553 = vmatprep.subr.mxu1 %v2743_v6 }
 0x4ea   :  { %1554 = vmatpush2.msra.mxu1 %v2712_v0 }
 0x4eb   :  { %1555 = vmatprep.subr.mxu1 %v2743_v6 }
 0x4ec   :  { %1556 = vmatpush2.msra.mxu1 %v2713_v1 }
 0x4ed   :  { %1557 = vmatprep.subr.mxu1 %v2743_v6 }
 0x4ee   :  { %1558 = vmatpush2.msra.mxu1 %v2714_v2 }
 0x4ef   :  { %1559 = vmatprep.subr.mxu1 %v2743_v6 }
 0x4f0   :  { %1560 = vmatpush2.msra.mxu1 %v2715_v3 }
 0x4f1   :  { %1561 = vmatprep.subr.mxu1 %v2743_v6 }
 0x4f2   :  { %1562 = vmatpush2.msra.mxu1 %v2716_v4 }
 0x4f3   :  { %1563 = vmatprep.subr.mxu1 %v2743_v6 }
 0x4f4   :  { %1564 = vmatpush2.msra.mxu1 %v2717_v5 }
 0x4f5   :  { %1565 = vmatprep.subr.mxu1 %v2743_v6 }
 0x4f6   :  { %1566 = vmatpush2.msra.mxu1 %v2718_v7 }
 0x4f7   :  { %1567 = vmatprep.subr.mxu1 %v2743_v6 }
 0x4f8   :  { %1568 = vmatpush2.msra.mxu1 %v2719_v8 }
 0x4f9   :  { %1569 = vmatprep.subr.mxu1 %v2743_v6 }
 0x4fa   :  { %1570 = vmatpush2.msra.mxu1 %v2720_v9 }
 0x4fb   :  { %1889 = vmatprep.subr.mxu1 %v2743_v6 }
 0x583   :  { %v1417_v19 = vpop.f32.mrf.mxu1 }
 0x584   :  { %v4151_v33 = vadd.f32 %v1417_v19, %v1160_v44 }
 0x585   :  { %v1419_v20 = vpop.f32.mrf.mxu1 }
 0x586   :  { %v4144_v27 = vadd.f32 %v1419_v20, %v1162_v23  ;;  %v1471_v21 = vmul.f32 %v4151_v33, %v4151_v33 }
 0x587   :  { %v1423_v49 = vpop.f32.mrf.mxu1 }
 0x588   :  { %v4146_v28 = vadd.f32 %v1423_v49, %v1166_v24  ;;  %v1472_v36 = vmul.f32 %v4144_v27, %v4144_v27  ;;  %v1458_v41 = vsel %vm349_vm0, %v4144_v27, 0.0 }
 0x589   :  { %v1425_v30 = vpop.f32.mrf.mxu1 }
 0x58a   :  { %v4149_v32 = vadd.f32 %v1425_v30, %v1168_v51  ;;  %v1473_v34 = vmul.f32 %v4146_v28, %v4146_v28  ;;  %v1448_v25 = vadd.f32 %v4146_v28, %v4151_v33  ;;  %v1489_v52 = vsel %vm349_vm0, %v1472_v36, 0.0 }
 0x58b   :  { %v1429_v46 = vpop.f32.mrf.mxu1 }
 0x58c   :  { %v1474_v38 = vmul.f32 %v4149_v32, %v4149_v32  ;;  %v4156_v39 = vadd.f32 %v1429_v46, %v1172_v31  ;;  %v1459_v43 = vsel %vm349_vm0, %v4149_v32, 0.0  ;;  %v1479_v53 = vadd.f32 %v1473_v34, %v1471_v21 }
 0x58d   :  { %v1431_v40 = vpop.f32.mrf.mxu1  ;;  %v1460_v55 = vadd.f32 %v1459_v43, %v1458_v41 }
 0x58e   :  { %v4166_v22 = vadd.f32 %v1431_v40, %v1174_v37  ;;  %v1475_v35 = vmul.f32 %v4156_v39, %v4156_v39  ;;  %v1490_v45 = vsel %vm349_vm0, %v1474_v38, 0.0  ;;  %v1449_v56 = vadd.f32 %v1448_v25, %v4156_v39  ;;  %v2550_v25 = vld [vmem:[%s4625_s4 + $0x158] sm:$0xff] }
 0x58f   :  { %v1435_v29 = vpop.f32.mrf.mxu1  ;;  %v1491_v63 = vadd.f32 %v1490_v45, %v1489_v52  ;;  %v2547_v45 = vld [vmem:[%s4625_s4 + $0x140] sm:$0xff]  ;;  %v2544_v52 = vld [vmem:[%s4625_s4 + $0x128] sm:$0xff] }
 0x590   :  { %v1461_v54 = vsel %vm349_vm0, %v4166_v22, 0.0  ;;  %v1476_v48 = vmul.f32 %v4166_v22, %v4166_v22  ;;  %v4181_v50 = vadd.f32 %v1435_v29, %v1178_v26  ;;  %v1480_v0 = vadd.f32 %v1479_v53, %v1475_v35  ;;  %v2549_v35 = vld [vmem:[%s4625_s4 + $0x150] sm:$0xff]  ;;  %v2548_v29 = vld [vmem:[%s4625_s4 + $0x148] sm:$0xff]  ;;  %v2543_v53 = vld [vmem:[%s4625_s4 + $0x120] sm:$0xff] }
 0x591   :  { %v1437_v58 = vpop.f32.mrf.mxu1  ;;  %v1462_v1 = vadd.f32 %v1461_v54, %v1460_v55  ;;  %v2546_v54 = vld [vmem:[%s4625_s4 + $0x138] sm:$0xff] }
 0x592   :  { %v1492_v59 = vsel %vm349_vm0, %v1476_v48, 0.0  ;;  %v1450_v60 = vsel %vm340_vm1, %v4181_v50, 0.0  ;;  %v1477_v61 = vmul.f32 %v4181_v50, %v4181_v50  ;;  %v4190_v62 = vadd.f32 %v1437_v58, %v1180_v42  ;;  %v2545_v48 = vld [vmem:[%s4625_s4 + $0x130] sm:$0xff]  ;;  %v2542_v55 = vld [vmem:[%s4625_s4 + $0x118] sm:$0xff]  ;;  %v2540_v58 = vld [vmem:[%s4625_s4 + $0x108] sm:$0xff] }
 0x593   :  { %v1451_v2 = vadd.f32 %v1450_v60, %v1449_v56  ;;  %v1493_v7 = vadd.f32 %v1492_v59, %v1491_v63  ;;  %v2541_v56 = vld [vmem:[%s4625_s4 + $0x110] sm:$0xff]  ;;  %v2539_v59 = vld [vmem:[%s4625_s4 + $0x100] sm:$0xff]  ;;  %v2538_v60 = vld [vmem:[%s4625_s4 + $0xf8] sm:$0xff] }
 0x594   :  { %v1481_v3 = vsel %vm340_vm1, %v1477_v61, 0.0  ;;  %v1463_v4 = vsel %vm355_vm2, %v4190_v62, 0.0  ;;  %v1478_v5 = vmul.f32 %v4190_v62, %v4190_v62  ;;  %v2537_v61 = vld [vmem:[%s4625_s4 + $0xf0] sm:$0xff]  ;;  %v2536_v63 = vld [vmem:[%s4625_s4 + $0xe8] sm:$0xff] }
 0x595   :  { %v1452_v8 = vrot.slane %v1451_v2, 4  ;;  %v1482_v9 = vadd.f32 %v1481_v3, %v1480_v0  ;;  %v1464_v10 = vadd.f32 %v1463_v4, %v1462_v1  ;;  %v2535_v0 = vld [vmem:[%s4625_s4 + $0xe0] sm:$0xff]  ;;  %v2562_v1 = vld [vmem:[%s4625_s4 + $0x1b8] sm:$0xff]  ;;  %v2560_v3 = vld [vmem:[%s4625_s4 + $0x1a8] sm:$0xff] }
 0x596   :  { %v1494_v11 = vsel %vm355_vm2, %v1478_v5, 0.0  ;;  %v2559_v4 = vld [vmem:[%s4625_s4 + $0x1a0] sm:$0xff]  ;;  %v2558_v5 = vld [vmem:[%s4625_s4 + $0x198] sm:$0xff] }
 0x597   :  { %v1453_v12 = vadd.f32 %v1452_v8, %v1451_v2  ;;  %v1483_v13 = vrot.slane %v1482_v9, 4  ;;  %v1465_v14 = vrot.slane %v1464_v10, 4  ;;  %v1495_v15 = vadd.f32 %v1494_v11, %v1493_v7  ;;  %v2561_v2 = vld [vmem:[%s4625_s4 + $0x1b0] sm:$0xff] }
 0x598   :  { %v2557_v7 = vld [vmem:[%s4625_s4 + $0x190] sm:$0xff] }
 0x599   :  { %v1454_v16 = vrot.slane %v1453_v12, 2  ;;  %v1484_v17 = vadd.f32 %v1483_v13, %v1482_v9  ;;  %v1466_v19 = vadd.f32 %v1465_v14, %v1464_v10  ;;  %v1496_v20 = vrot.slane %v1495_v15, 4 }
 0x59b   :  { %v1485_v23 = vrot.slane %v1484_v17, 2  ;;  %v1467_v24 = vrot.slane %v1466_v19, 2  ;;  %v1497_v49 = vadd.f32 %v1496_v20, %v1495_v15  ;;  %v1455_v51 = vadd.f32 %v1454_v16, %v1453_v12 }
 0x59d   :  { %v1486_v44 = vadd.f32 %v1485_v23, %v1484_v17  ;;  %v1468_v30 = vadd.f32 %v1467_v24, %v1466_v19  ;;  %v1498_v31 = vrot.slane %v1497_v49, 2  ;;  %v1456_v36 = vrot.slane %v1455_v51, 1  ;;  %v1583_v19 = vld [vmem:[%s4631_s10] sm:$0x1] }
 0x59e   :  { %v1604_v24 = vld [vmem:[%s4632_s11] sm:$0x1] }
 0x59f   :  { %v1469_v46 = vrot.slane %v1468_v30, 1  ;;  %v1499_v37 = vadd.f32 %v1498_v31, %v1497_v49  ;;  %v1487_v38 = vrot.slane %v1486_v44, 1  ;;  %v1457_v43 = vadd.f32 %v1456_v36, %v1455_v51  ;;  %v1738_v36 = vld [vmem:[%s4625_s4 + $0x50] sm:$0xff] }
 0x5a1   :  { %v1500_v34 = vrot.slane %v1499_v37, 1  ;;  %v1488_v40 = vadd.f32 %v1487_v38, %v1486_v44  ;;  %v1470_v26 = vadd.f32 %v1469_v46, %v1468_v30  ;;  %v1743_v30 = vld [vmem:[%s4625_s4 + $0x78] sm:$0xff]  ;;  %v1741_v46 = vld [vmem:[%s4625_s4 + $0x68] sm:$0xff] }
 0x5a2   :  { %v1739_v38 = vld [vmem:[%s4625_s4 + $0x58] sm:$0xff] }
 0x5a3   :  { %v1501_v42 = vadd.f32 %v1500_v34, %v1499_v37  ;;  %v1502_v41 = vsel %vm395_vm3, %v1457_v43, %v1488_v40  ;;  %v1740_v37 = vld [vmem:[%s4625_s4 + $0x60] sm:$0xff]  ;;  %v1737_v34 = vld [vmem:[%s4625_s4 + $0x48] sm:$0xff] }
 0x5a4   :  { %v1736_v40 = vld [vmem:[%s4625_s4 + $0x40] sm:$0xff]  ;;  %v1733_v43 = vld [vmem:[%s4625_s4 + $0x28] sm:$0xff] }
 0x5a5   :  { %v1503_v21 = vsel %vm395_vm3, %v1470_v26, %v1501_v42  ;;  %v1735_v26 = vld [vmem:[%s4625_s4 + $0x38] sm:$0xff]  ;;  %v1734_v42 = vld [vmem:[%s4625_s4 + $0x30] sm:$0xff] }
 0x5a6   :  { %2529 = vmatprep.mubr.msk.f32.mxu1 %vm349_vm0, %v1503_v21  ;;  %v1732_v21 = vld [vmem:[%s4625_s4 + $0x20] sm:$0xff] }
 0x5a7   :  { %1572 = vmatmul.mubr.f32.vlgmr.msra.gmra.mxu1 %v1502_v41  ;;  %v1731_v41 = vld [vmem:[%s4625_s4 + $0x18] sm:$0xff] }
 0x5a8   :  { %1890 = vmatpush1.msra.mxu1 %v2550_v25  ;;  %v1730_v25 = vld [vmem:[%s4625_s4 + $0x10] sm:$0xff] }
 0x5a9   :  { %1891 = vmatprep.subr.mxu1 %v2743_v6 }
 0x5aa   :  { %1892 = vmatpush1.msra.mxu1 %v2549_v35  ;;  %v1729_v35 = vld [vmem:[%s4625_s4 + $0x8] sm:$0xff] }
 0x5ab   :  { %1893 = vmatprep.subr.mxu1 %v2743_v6 }
 0x5ac   :  { %1894 = vmatpush1.msra.mxu1 %v2548_v29  ;;  %v1728_v29 = vld [vmem:[%s4625_s4] sm:$0xff] }
 0x5ad   :  { %1895 = vmatprep.subr.mxu1 %v2743_v6 }
 0x5ae   :  { %1896 = vmatpush1.msra.mxu1 %v2547_v45  ;;  %v1755_v45 = vld [vmem:[%s4625_s4 + $0xd8] sm:$0xff] }
 0x5af   :  { %1897 = vmatprep.subr.mxu1 %v2743_v6 }
 0x5b0   :  { %1898 = vmatpush1.msra.mxu1 %v2546_v54  ;;  %v1754_v54 = vld [vmem:[%s4625_s4 + $0xd0] sm:$0xff] }
 0x5b1   :  { %1899 = vmatprep.subr.mxu1 %v2743_v6 }
 0x5b2   :  { %1900 = vmatpush1.msra.mxu1 %v2545_v48  ;;  %v1753_v48 = vld [vmem:[%s4625_s4 + $0xc8] sm:$0xff] }
 0x5b3   :  { %1901 = vmatprep.subr.mxu1 %v2743_v6 }
 0x5b4   :  { %1902 = vmatpush1.msra.mxu1 %v2544_v52  ;;  %v1752_v52 = vld [vmem:[%s4625_s4 + $0xc0] sm:$0xff] }
 0x5b5   :  { %1903 = vmatprep.subr.mxu1 %v2743_v6 }
 0x5b6   :  { %1904 = vmatpush1.msra.mxu1 %v2543_v53  ;;  %v1751_v53 = vld [vmem:[%s4625_s4 + $0xb8] sm:$0xff] }
 0x5b7   :  { %1905 = vmatprep.subr.mxu1 %v2743_v6 }
 0x5b8   :  { %1906 = vmatpush1.msra.mxu1 %v2542_v55  ;;  %v1750_v55 = vld [vmem:[%s4625_s4 + $0xb0] sm:$0xff] }
 0x5b9   :  { %1907 = vmatprep.subr.mxu1 %v2743_v6 }
 0x5ba   :  { %1908 = vmatpush1.msra.mxu1 %v2541_v56  ;;  %v1749_v56 = vld [vmem:[%s4625_s4 + $0xa8] sm:$0xff] }
 0x5bb   :  { %1909 = vmatprep.subr.mxu1 %v2743_v6 }
 0x5bc   :  { %1910 = vmatpush1.msra.mxu1 %v2540_v58  ;;  %v2556_v58 = vld [vmem:[%s4625_s4 + $0x188] sm:$0xff] }
 0x5bd   :  { %1911 = vmatprep.subr.mxu1 %v2743_v6 }
 0x5be   :  { %1912 = vmatpush1.msra.mxu1 %v2539_v59  ;;  %v1748_v59 = vld [vmem:[%s4625_s4 + $0xa0] sm:$0xff] }
 0x5bf   :  { %1913 = vmatprep.subr.mxu1 %v2743_v6 }
 0x5c0   :  { %1914 = vmatpush1.msra.mxu1 %v2538_v60  ;;  %v2555_v60 = vld [vmem:[%s4625_s4 + $0x180] sm:$0xff] }
 0x5c1   :  { %1915 = vmatprep.subr.mxu1 %v2743_v6 }
 0x5c2   :  { %1916 = vmatpush1.msra.mxu1 %v2537_v61  ;;  %v1747_v61 = vld [vmem:[%s4625_s4 + $0x98] sm:$0xff] }
 0x5c3   :  { %1917 = vmatprep.subr.mxu1 %v2743_v6 }
 0x5c4   :  { %1918 = vmatpush1.msra.mxu1 %v2536_v63  ;;  %v2554_v63 = vld [vmem:[%s4625_s4 + $0x178] sm:$0xff] }
 0x5c5   :  { %1919 = vmatprep.subr.mxu1 %v2743_v6 }
 0x5c6   :  { %1920 = vmatpush1.msra.mxu1 %v2535_v0  ;;  %v1746_v0 = vld [vmem:[%s4625_s4 + $0x90] sm:$0xff] }
 0x5c7   :  { %1929 = vmatprep.subr.mxu1 %v2743_v6 }
 0x5c8   :  { %1930 = vmatpush2.msra.mxu1 %v2562_v1  ;;  %v2553_v1 = vld [vmem:[%s4625_s4 + $0x170] sm:$0xff] }
 0x5c9   :  { %1931 = vmatprep.subr.mxu1 %v2743_v6 }
 0x5ca   :  { %1932 = vmatpush2.msra.mxu1 %v2561_v2  ;;  %v1745_v2 = vld [vmem:[%s4625_s4 + $0x88] sm:$0xff] }
 0x5cb   :  { %1933 = vmatprep.subr.mxu1 %v2743_v6 }
 0x5cc   :  { %1934 = vmatpush2.msra.mxu1 %v2560_v3  ;;  %v2552_v3 = vld [vmem:[%s4625_s4 + $0x168] sm:$0xff] }
 0x5cd   :  { %1935 = vmatprep.subr.mxu1 %v2743_v6 }
 0x5ce   :  { %1936 = vmatpush2.msra.mxu1 %v2559_v4  ;;  %v1744_v4 = vld [vmem:[%s4625_s4 + $0x80] sm:$0xff] }
 0x5cf   :  { %1937 = vmatprep.subr.mxu1 %v2743_v6 }
 0x5d0   :  { %1938 = vmatpush2.msra.mxu1 %v2558_v5  ;;  %v2551_v5 = vld [vmem:[%s4625_s4 + $0x160] sm:$0xff] }
 0x5d1   :  { %1939 = vmatprep.subr.mxu1 %v2743_v6 }
 0x5d2   :  { %1940 = vmatpush2.msra.mxu1 %v2557_v7 }
 0x5d3   :  { %1941 = vmatprep.subr.mxu1 %v2743_v6 }
 0x5d4   :  { %1942 = vmatpush2.msra.mxu1 %v2556_v58  ;;  %v1856_v58 = vld [vmem:[%s4626_s5 + $0x18] sm:$0xff] }
 0x5d5   :  { %1943 = vmatprep.subr.mxu1 %v2743_v6 }
 0x5d6   :  { %1944 = vmatpush2.msra.mxu1 %v2555_v60  ;;  %v1857_v60 = vld [vmem:[%s4626_s5 + $0x20] sm:$0xff] }
 0x5d7   :  { %1945 = vmatprep.subr.mxu1 %v2743_v6 }
 0x5d8   :  { %1946 = vmatpush2.msra.mxu1 %v2554_v63  ;;  %v1858_v63 = vld [vmem:[%s4626_s5 + $0x28] sm:$0xff] }
 0x5d9   :  { %1947 = vmatprep.subr.mxu1 %v2743_v6 }
 0x5da   :  { %1948 = vmatpush2.msra.mxu1 %v2553_v1  ;;  %v1859_v1 = vld [vmem:[%s4626_s5 + $0x30] sm:$0xff] }
 0x5db   :  { %1949 = vmatprep.subr.mxu1 %v2743_v6 }
 0x5dc   :  { %1950 = vmatpush2.msra.mxu1 %v2552_v3  ;;  %v1853_v3 = vld [vmem:[%s4626_s5] sm:$0xff] }
 0x5dd   :  { %1951 = vmatprep.subr.mxu1 %v2743_v6 }
 0x5de   :  { %1952 = vmatpush2.msra.mxu1 %v2551_v5 }
 0x5df   :  { %2670 = vmatprep.subr.mxu1 %v2743_v6 }
 0x667   :  { %v1573_v8 = vpop.f32.mrf.mxu1 }
 0x668   :  { %v1577_v9 = vmul.f32 0.0025510204, %v1573_v8 }
 0x669   :  { %v1575_v10 = vpop.f32.mrf.mxu1 }
 0x66a   :  { %v1578_v11 = vmul.f32 %v1577_v9, %v1577_v9 }
 0x66c   :  { %v1580_v12 = vrot.slane %v1578_v11, 7 }
 0x66e   :  { %v1582_v13 = vsub.f32 %v1577_v9, %v1580_v12 }
 0x670   :  { %v1584_v14 = vadd.f32 1e-05, %v1582_v13 }
 0x672   :  { %2689 = vrsqrt.f32 %v1584_v14 }
 0x67f   :  { %v2690_v15 = vpop.eup %2689 }
 0x680   :  { %v1593_v16 = vrot.slane %v2690_v15, %v3487_v47 }
 0x682   :  { %v1594_v17 = vcombine.high %v1593_v16, %v1593_v16 }
 0x684   :  { %v1601_v20 = vrot.slane %v1594_v17, %v3487_v47  ;;  %v1742_v47 = vld [vmem:[%s4625_s4 + $0x70] sm:$0xff] }
 0x686   :  { %v1603_v23 = vmul.f32 %v1601_v20, %v1583_v19 }
 0x688   :  { %v1605_v49 = vmul.f32 %v1603_v23, %v1577_v9 }
 0x68a   :  { %v1606_v51 = vsub.f32 %v1604_v24, %v1605_v49 }
 0x68c   :  { %v1611_v44 = vrot.slane %v1606_v51, %v3498_v57 }
 0x68e   :  { %v1613_v31 = vsel %vm395_vm3, %v1603_v23, %v1611_v44 }
 0x68f   :  { %2530 = vmatmul.mubr.msk.f32.vlgmr.msra.gmra.mxu0 %vm540_vm4, %v1613_v31 }
 0x690   :  { %1769 = vmatpush1.msra.mxu0 %v1743_v30 }
 0x691   :  { %1770 = vmatprep.subr.mxu0 %v2743_v6 }
 0x692   :  { %1771 = vmatpush1.msra.mxu0 %v1742_v47 }
 0x693   :  { %1772 = vmatprep.subr.mxu0 %v2743_v6 }
 0x694   :  { %1773 = vmatpush1.msra.mxu0 %v1741_v46 }
 0x695   :  { %1774 = vmatprep.subr.mxu0 %v2743_v6 }
 0x696   :  { %1775 = vmatpush1.msra.mxu0 %v1740_v37 }
 0x697   :  { %1776 = vmatprep.subr.mxu0 %v2743_v6 }
 0x698   :  { %1777 = vmatpush1.msra.mxu0 %v1739_v38 }
 0x699   :  { %1778 = vmatprep.subr.mxu0 %v2743_v6 }
 0x69a   :  { %1779 = vmatpush1.msra.mxu0 %v1738_v36 }
 0x69b   :  { %1780 = vmatprep.subr.mxu0 %v2743_v6 }
 0x69c   :  { %1781 = vmatpush1.msra.mxu0 %v1737_v34 }
 0x69d   :  { %1782 = vmatprep.subr.mxu0 %v2743_v6 }
 0x69e   :  { %1783 = vmatpush1.msra.mxu0 %v1736_v40 }
 0x69f   :  { %1784 = vmatprep.subr.mxu0 %v2743_v6 }
 0x6a0   :  { %1785 = vmatpush1.msra.mxu0 %v1735_v26 }
 0x6a1   :  { %1786 = vmatprep.subr.mxu0 %v2743_v6 }
 0x6a2   :  { %1787 = vmatpush1.msra.mxu0 %v1734_v42 }
 0x6a3   :  { %1788 = vmatprep.subr.mxu0 %v2743_v6 }
 0x6a4   :  { %1789 = vmatpush1.msra.mxu0 %v1733_v43 }
 0x6a5   :  { %1790 = vmatprep.subr.mxu0 %v2743_v6 }
 0x6a6   :  { %1791 = vmatpush1.msra.mxu0 %v1732_v21 }
 0x6a7   :  { %1792 = vmatprep.subr.mxu0 %v2743_v6 }
 0x6a8   :  { %1793 = vmatpush1.msra.mxu0 %v1731_v41 }
 0x6a9   :  { %1794 = vmatprep.subr.mxu0 %v2743_v6 }
 0x6aa   :  { %1795 = vmatpush1.msra.mxu0 %v1730_v25 }
 0x6ab   :  { %1796 = vmatprep.subr.mxu0 %v2743_v6 }
 0x6ac   :  { %1797 = vmatpush1.msra.mxu0 %v1729_v35 }
 0x6ad   :  { %1798 = vmatprep.subr.mxu0 %v2743_v6 }
 0x6ae   :  { %1799 = vmatpush1.msra.mxu0 %v1728_v29 }
 0x6af   :  { %1808 = vmatprep.subr.mxu0 %v2743_v6 }
 0x6b0   :  { %1809 = vmatpush2.msra.mxu0 %v1755_v45 }
 0x6b1   :  { %1810 = vmatprep.subr.mxu0 %v2743_v6 }
 0x6b2   :  { %1811 = vmatpush2.msra.mxu0 %v1754_v54 }
 0x6b3   :  { %1812 = vmatprep.subr.mxu0 %v2743_v6 }
 0x6b4   :  { %1813 = vmatpush2.msra.mxu0 %v1753_v48  ;;  %v2567_v48 = vld [vmem:[%s4626_s5 + $0x38] sm:$0xff] }
 0x6b5   :  { %1814 = vmatprep.subr.mxu0 %v2743_v6 }
 0x6b6   :  { %1815 = vmatpush2.msra.mxu0 %v1752_v52  ;;  %v1854_v52 = vld [vmem:[%s4626_s5 + $0x8] sm:$0xff] }
 0x6b7   :  { %1816 = vmatprep.subr.mxu0 %v2743_v6 }
 0x6b8   :  { %1817 = vmatpush2.msra.mxu0 %v1751_v53  ;;  %v2568_v53 = vld [vmem:[%s4626_s5 + $0x40] sm:$0xff] }
 0x6b9   :  { %1818 = vmatprep.subr.mxu0 %v2743_v6 }
 0x6ba   :  { %1819 = vmatpush2.msra.mxu0 %v1750_v55  ;;  %v1855_v55 = vld [vmem:[%s4626_s5 + $0x10] sm:$0xff] }
 0x6bb   :  { %1820 = vmatprep.subr.mxu0 %v2743_v6 }
 0x6bc   :  { %1821 = vmatpush2.msra.mxu0 %v1749_v56  ;;  %v2569_v56 = vld [vmem:[%s4626_s5 + $0x48] sm:$0xff] }
 0x6bd   :  { %1822 = vmatprep.subr.mxu0 %v2743_v6 }
 0x6be   :  { %1823 = vmatpush2.msra.mxu0 %v1748_v59  ;;  %v2570_v59 = vld [vmem:[%s4626_s5 + $0x50] sm:$0xff] }
 0x6bf   :  { %1824 = vmatprep.subr.mxu0 %v2743_v6 }
 0x6c0   :  { %1825 = vmatpush2.msra.mxu0 %v1747_v61  ;;  %v2571_v61 = vld [vmem:[%s4626_s5 + $0x58] sm:$0xff] }
 0x6c1   :  { %1826 = vmatprep.subr.mxu0 %v2743_v6 }
 0x6c2   :  { %1827 = vmatpush2.msra.mxu0 %v1746_v0  ;;  %v2572_v0 = vld [vmem:[%s4626_s5 + $0x60] sm:$0xff] }
 0x6c3   :  { %1828 = vmatprep.subr.mxu0 %v2743_v6 }
 0x6c4   :  { %1829 = vmatpush2.msra.mxu0 %v1745_v2  ;;  %v2573_v2 = vld [vmem:[%s4626_s5 + $0x68] sm:$0xff]  ;;  %s2747_s5 = smov [#allocation4]  }
 0x6c5   :  { %1830 = vmatprep.subr.mxu0 %v2743_v6  ;;  %s2366_s29 = sshll.u32 %s2747_s5, 4  ;;  %s2367_s29 = int_to_ptr.vmem [resolvable:$true] %s2366_s29 }
 0x6c6   :  { %1831 = vmatpush2.msra.mxu0 %v1744_v4  ;;  %s2721_s4 = scalar_lea.vmem %s2367_s29, 896  ;;  %p2726_p1 = scmp.lt.s32.totalorder %s2367_s29, %s2367_s29 }
 0x6c7   :  { %2612 = vmatprep.subr.mxu0 %v2743_v6  ;;  %p2722_p0 = scmp.ne.s32.totalorder %s2367_s29, %s2721_s4  ;;  %p2727_p2 = scmp.lt.s32.totalorder %s2721_s4, %s2721_s4 }
 0x6c9   :  { %p2728_p3 = por %p2727_p2, %p2726_p1 }
 0x6cb   :  { %p2729_p4 = pnand %p2728_p3, %p2722_p0 }
 0x74f   :  { %v1683_v7 = vpop.f32.mrf.mxu0 }
 0x750   :  { %v1691_v8 = vrot.slane %v1683_v7, %v3498_v57  ;;  %v1707_v12 = vrot.slane %v1683_v7, %v3705_v18 }
 0x751   :  { %v1685_v9 = vpop.f32.mrf.mxu0 }
 0x752   :  { %v1696_v10 = vmul.f32 %v1691_v8, %v4151_v33  ;;  %v1695_v11 = vrot.slane %v1685_v9, %v3498_v57  ;;  %v1711_v15 = vrot.slane %v1685_v9, %v3705_v18  ;;  %v1698_v17 = vmul.f32 %v1691_v8, %v4146_v28 }
 0x753   :  { %v1700_v51 = vmul.f32 %v1691_v8, %v4156_v39 }
 0x754   :  { %v1697_v13 = vmul.f32 %v1695_v11, %v4144_v27  ;;  %v1699_v14 = vmul.f32 %v1695_v11, %v4149_v32  ;;  %v1712_v16 = vadd.f32 %v1707_v12, %v1696_v10  ;;  %v1701_v19 = vmul.f32 %v1695_v11, %v4166_v22 }
 0x755   :  { %v1714_v33 = vadd.f32 %v1707_v12, %v1698_v17  ;;  %v1703_v44 = vmul.f32 %v1695_v11, %v4190_v62  ;;  %v1716_v32 = vadd.f32 %v1707_v12, %v1700_v51  ;;  %v1702_v22 = vmul.f32 %v1691_v8, %v4181_v50 }
 0x756   :  { %v1713_v20 = vadd.f32 %v1711_v15, %v1697_v13  ;;  %v1715_v23 = vadd.f32 %v1711_v15, %v1699_v14  ;;  %v1720_v49 = vmax.f32 %v1712_v16, 0.0  ;;  %v1717_v18 = vadd.f32 %v1711_v15, %v1701_v19 }
 0x757   :  { %v1722_v28 = vmax.f32 %v1714_v33, 0.0  ;;  %v1719_v39 = vadd.f32 %v1711_v15, %v1703_v44  ;;  %v1724_v62 = vmax.f32 %v1716_v32, 0.0  ;;  %v1718_v31 = vadd.f32 %v1707_v12, %v1702_v22 }
 0x758   :  { %v1721_v24 = vmax.f32 %v1713_v20, 0.0  ;;  %v1723_v27 = vmax.f32 %v1715_v23, 0.0  ;;  %v1725_v30 = vmax.f32 %v1717_v18, 0.0 }
 0x759   :  { %v1727_v47 = vmax.f32 %v1719_v39, 0.0  ;;  %v1726_v46 = vmax.f32 %v1718_v31, 0.0 }
 0x75a   :  { %2531 = vmatprep.mubr.msk.f32.mxu0 %vm349_vm0, %v1721_v24  ;;  %2563 = vmatprep.mubr.msk.f32.mxu1 %vm349_vm0, %v1721_v24 }
 0x75b   :  { %1833 = vmatmul.mubr.f32.vlgmr.msra.gmra.mxu0 %v1720_v49  ;;  %1954 = vmatmul.mubr.f32.vlgmr.msra.gmra.mxu1 %v1720_v49 }
 0x75c   :  { %2532 = vmatprep.mubr.msk.f32.mxu0 %vm349_vm0, %v1723_v27  ;;  %2564 = vmatprep.mubr.msk.f32.mxu1 %vm349_vm0, %v1723_v27 }
 0x75f   :  { %1838 = vmatmul.mubr.f32.gmra.mxu0 %v1722_v28  ;;  %1959 = vmatmul.mubr.f32.gmra.mxu1 %v1722_v28 }
 0x760   :  { %2533 = vmatprep.mubr.msk.f32.mxu0 %vm349_vm0, %v1725_v30  ;;  %2565 = vmatprep.mubr.msk.f32.mxu1 %vm349_vm0, %v1725_v30 }
 0x763   :  { %1843 = vmatmul.mubr.f32.gmra.mxu0 %v1724_v62  ;;  %1964 = vmatmul.mubr.f32.gmra.mxu1 %v1724_v62 }
 0x764   :  { %2534 = vmatprep.mubr.msk.f32.mxu0 %vm349_vm0, %v1727_v47  ;;  %2566 = vmatprep.mubr.msk.f32.mxu1 %vm349_vm0, %v1727_v47 }
 0x767   :  { %1848 = vmatmul.mubr.f32.gmra.mxu0 %v1726_v46  ;;  %1969 = vmatmul.mubr.f32.gmra.mxu1 %v1726_v46 }
 0x768   :  { %2620 = vmatprep.mubr.msk.f32.mxu0 %vm2745_vm6, %v2743_v6  ;;  %2652 = vmatprep.mubr.msk.f32.mxu1 %vm2745_vm6, %v2743_v6 }
 0x81b   :  { %v1834_v50 = vpop.f32.mrf.mxu0  ;;  %v1955_v37 = vpop.f32.mrf.mxu1 }
 0x81d   :  { %v1836_v38 = vpop.f32.mrf.mxu0  ;;  %v1957_v36 = vpop.f32.mrf.mxu1 }
 0x81f   :  { %v1839_v34 = vpop.f32.mrf.mxu0  ;;  %v1960_v40 = vpop.f32.mrf.mxu1 }
 0x821   :  { %v1841_v26 = vpop.f32.mrf.mxu0  ;;  %v1962_v42 = vpop.f32.mrf.mxu1 }
 0x823   :  { %v1844_v43 = vpop.f32.mrf.mxu0  ;;  %v1965_v21 = vpop.f32.mrf.mxu1 }
 0x825   :  { %v1846_v41 = vpop.f32.mrf.mxu0  ;;  %v1967_v25 = vpop.f32.mrf.mxu1 }
 0x827   :  { %v1849_v35 = vpop.f32.mrf.mxu0  ;;  %v1970_v29 = vpop.f32.mrf.mxu1 }
 0x828   :  { %2613 = vmatpush3.msk.msra.mxu0 %vm340_vm1, %v1970_v29  ;;  %2674 = vmatpush3.msk.msra.mxu1 %vm340_vm1, %v1849_v35 }
 0x829   :  { %v1851_v45 = vpop.f32.mrf.mxu0  ;;  %v1972_v54 = vpop.f32.mrf.mxu1  ;;  %2614 = vmatprep.subr.mxu0 %v2743_v6  ;;  %2671 = vmatprep.subr.mxu1 %v2743_v6 }
 0x82a   :  { %2615 = vmatpush3.msra.mxu0 %v1965_v21  ;;  %2675 = vmatpush3.msra.mxu1 %v1844_v43 }
 0x82b   :  { %2616 = vmatprep.subr.mxu0 %v2743_v6  ;;  %2672 = vmatprep.subr.mxu1 %v2743_v6 }
 0x82c   :  { %2617 = vmatpush3.msra.mxu0 %v1960_v40  ;;  %2676 = vmatpush3.msra.mxu1 %v1839_v34 }
 0x82d   :  { %2618 = vmatprep.subr.mxu0 %v2743_v6  ;;  %2673 = vmatprep.subr.mxu1 %v2743_v6 }
 0x82e   :  { %2619 = vmatpush3.msra.mxu0 %v1955_v37  ;;  %2677 = vmatpush3.msra.mxu1 %v1834_v50 }
 0x82f   :  { %2621 = vmatmul.mubr.msk.f32.vlgmr.msra.gmra.mxu0 %vm967_vm5, %v2567_v48  ;;  %2641 = vmatprep.subr.mxu0 %v2743_v6 }
 0x830   :  { %2642 = vmatpush3.msk.msra.mxu0 %vm340_vm1, %v1849_v35  ;;  %2623 = vmatprep.mubr.msk.f32.mxu0 %vm2745_vm6, %v2743_v6 }
 0x831   :  { %2643 = vmatprep.subr.mxu0 %v2743_v6  ;;  %2653 = vmatmul.mubr.msk.f32.vlgmr.msra.gmra.mxu1 %vm967_vm5, %v1854_v52 }
 0x832   :  { %2644 = vmatpush3.msra.mxu0 %v1844_v43  ;;  %2655 = vmatprep.mubr.msk.f32.mxu1 %vm2745_vm6, %v2743_v6 }
 0x833   :  { %2624 = vmatmul.mubr.msk.f32.gmra.mxu0 %vm967_vm5, %v2568_v53  ;;  %2645 = vmatprep.subr.mxu0 %v2743_v6 }
 0x834   :  { %2646 = vmatpush3.msra.mxu0 %v1839_v34  ;;  %2626 = vmatprep.mubr.msk.f32.mxu0 %vm2745_vm6, %v2743_v6 }
 0x835   :  { %2647 = vmatprep.subr.mxu0 %v2743_v6  ;;  %2656 = vmatmul.mubr.msk.f32.gmra.mxu1 %vm967_vm5, %v1855_v55 }
 0x836   :  { %2648 = vmatpush3.msra.mxu0 %v1834_v50  ;;  %2658 = vmatprep.mubr.msk.f32.mxu1 %vm2745_vm6, %v2743_v6 }
 0x837   :  { %2627 = vmatmul.mubr.msk.f32.gmra.mxu0 %vm967_vm5, %v2569_v56 }
 0x838   :  { %2629 = vmatprep.mubr.msk.f32.mxu0 %vm2745_vm6, %v2743_v6 }
 0x839   :  { %2659 = vmatmul.mubr.msk.f32.gmra.mxu1 %vm967_vm5, %v1856_v58 }
 0x83a   :  { %2661 = vmatprep.mubr.msk.f32.mxu1 %vm2745_vm6, %v2743_v6 }
 0x83b   :  { %2630 = vmatmul.mubr.msk.f32.gmra.mxu0 %vm967_vm5, %v2570_v59 }
 0x83c   :  { %2632 = vmatprep.mubr.msk.f32.mxu0 %vm2745_vm6, %v2743_v6 }
 0x83d   :  { %2662 = vmatmul.mubr.msk.f32.gmra.mxu1 %vm967_vm5, %v1857_v60  ;;  %v2746_v60 = vmov 0  }
 0x83e   :  { %2664 = vmatprep.mubr.msk.f32.mxu1 %vm2745_vm6, %v2743_v6  ;;  %2685 = vset.pattern.permute.xlu0 %v2746_v60 }
 0x83f   :  { %2633 = vmatmul.mubr.msk.f32.gmra.mxu0 %vm967_vm5, %v2571_v61  ;;  %2686 = vset.pattern.permute.xlu1 %v2746_v60 }
 0x840   :  { %2635 = vmatprep.mubr.msk.f32.mxu0 %vm2745_vm6, %v2743_v6 }
 0x841   :  { %2665 = vmatmul.mubr.msk.f32.gmra.mxu1 %vm967_vm5, %v1858_v63 }
 0x842   :  { %2667 = vmatprep.mubr.msk.f32.mxu1 %vm2745_vm6, %v2743_v6 }
 0x843   :  { %2636 = vmatmul.mubr.msk.f32.gmra.mxu0 %vm967_vm5, %v2572_v0 }
 0x844   :  { %2638 = vmatprep.mubr.msk.f32.mxu0 %vm2745_vm6, %v2743_v6 }
 0x845   :  { %2668 = vmatmul.mubr.msk.f32.gmra.mxu1 %vm967_vm5, %v1859_v1 }
 0x847   :  { %2639 = vmatmul.mubr.msk.f32.gmra.mxu0 %vm967_vm5, %v2573_v2 }
 0x848   :  { %2649 = vmatprep.mubr.msk.f32.mxu0 %vm2745_vm6, %v2743_v6 }
 0x84b   :  { %2650 = vmatmul.mubr.msk.f32.vlgmr.msra.gmra.mxu0 %vm967_vm5, %v1853_v3 }
 0x8ef   :  { %v2072_v4 = vpop.f32.mrf.mxu0 }
 0x8f1   :  { %v2622_v5 = vpop.f32.mrf.mxu0  ;;  %v2201_v7 = vpop.f32.mrf.mxu1 }
 0x8f3   :  { %v2077_v8 = vpop.f32.mrf.mxu0  ;;  %v2654_v9 = vpop.f32.mrf.mxu1 }
 0x8f4   :  { %v4553_v10 = vadd.f32 %v2201_v7, %v2077_v8 }
 0x8f5   :  { %v2625_v11 = vpop.f32.mrf.mxu0  ;;  %v2206_v12 = vpop.f32.mrf.mxu1 }
 0x8f6   :  { %v2233_v13 = vsel %vm967_vm5, %v4553_v10, 0.0  ;;  %v2264_v6 = vmul.f32 %v4553_v10, %v4553_v10 }
 0x8f7   :  { %v2082_v14 = vpop.f32.mrf.mxu0  ;;  %2234 = vadd.xlane.f32.xlu0 %v2233_v13  ;;  %v2657_v15 = vpop.f32.mrf.mxu1 }
 0x8f8   :  { %v4559_v16 = vadd.f32 %v2206_v12, %v2082_v14  ;;  %v2273_v20 = vsel %vm967_vm5, %v2264_v6, 0.0 }
 0x8f9   :  { %v2628_v17 = vpop.f32.mrf.mxu0  ;;  %v2211_v19 = vpop.f32.mrf.mxu1 }
 0x8fa   :  { %v2236_v23 = vsel %vm967_vm5, %v4559_v16, 0.0  ;;  %v2265_v24 = vmul.f32 %v4559_v16, %v4559_v16 }
 0x8fb   :  { %v2087_v49 = vpop.f32.mrf.mxu0  ;;  %2274 = vadd.xlane.f32.xlu0 %v2273_v20  ;;  %2237 = vadd.xlane.f32.xlu1 %v2236_v23  ;;  %v2660_v33 = vpop.f32.mrf.mxu1 }
 0x8fc   :  { %v4566_v51 = vadd.f32 %v2211_v19, %v2087_v49  ;;  %v2276_v18 = vsel %vm967_vm5, %v2265_v24, 0.0 }
 0x8fd   :  { %v2631_v44 = vpop.f32.mrf.mxu0  ;;  %v2216_v27 = vpop.f32.mrf.mxu1 }
 0x8fe   :  { %v2239_v28 = vsel %vm967_vm5, %v4566_v51, 0.0  ;;  %v2266_v41 = vmul.f32 %v4566_v51, %v4566_v51 }
 0x8ff   :  { %v2092_v32 = vpop.f32.mrf.mxu0  ;;  %2277 = vadd.xlane.f32.xlu0 %v2276_v18  ;;  %2240 = vadd.xlane.f32.xlu1 %v2239_v28  ;;  %v2663_v22 = vpop.f32.mrf.mxu1 }
 0x900   :  { %v4571_v30 = vadd.f32 %v2216_v27, %v2092_v32  ;;  %v2279_v29 = vsel %vm967_vm5, %v2266_v41, 0.0 }
 0x901   :  { %v2634_v39 = vpop.f32.mrf.mxu0  ;;  %v2221_v62 = vpop.f32.mrf.mxu1 }
 0x902   :  { %v2242_v31 = vsel %vm967_vm5, %v4571_v30, 0.0  ;;  %v2267_v45 = vmul.f32 %v4571_v30, %v4571_v30 }
 0x903   :  { %v2097_v47 = vpop.f32.mrf.mxu0  ;;  %2243 = vadd.xlane.f32.xlu1 %v2242_v31  ;;  %v2666_v46 = vpop.f32.mrf.mxu1 }
 0x904   :  { %v4583_v25 = vadd.f32 %v2221_v62, %v2097_v47  ;;  %v2282_v52 = vsel %vm967_vm5, %v2267_v45, 0.0 }
 0x905   :  { %v2637_v50 = vpop.f32.mrf.mxu0  ;;  %v2226_v37 = vpop.f32.mrf.mxu1 }
 0x906   :  { %v2245_v48 = vsel %vm967_vm5, %v4583_v25, 0.0  ;;  %v2268_v53 = vmul.f32 %v4583_v25, %v4583_v25 }
 0x907   :  { %v2102_v38 = vpop.f32.mrf.mxu0  ;;  %v2669_v36 = vpop.f32.mrf.mxu1 }
 0x908   :  { %v4589_v54 = vadd.f32 %v2226_v37, %v2102_v38  ;;  %v2285_v58 = vsel %vm967_vm5, %v2268_v53, 0.0 }
 0x909   :  { %v2640_v34 = vpop.f32.mrf.mxu0 }
 0x90a   :  { %v2248_v55 = vsel %vm967_vm5, %v4589_v54, 0.0  ;;  %v2269_v56 = vmul.f32 %v4589_v54, %v4589_v54 }
 0x90b   :  { %v2196_v40 = vpop.f32.mrf.mxu0 }
 0x90c   :  { %v4575_v26 = vadd.f32 %v2196_v40, %v2072_v4  ;;  %v2288_v59 = vsel %vm967_vm5, %v2269_v56, 0.0 }
 0x90d   :  { %v2651_v42 = vpop.f32.mrf.mxu0 }
 0x90e   :  { %v2230_v43 = vsel %vm967_vm5, %v4575_v26, 0.0  ;;  %v2263_v21 = vmul.f32 %v4575_v26, %v4575_v26 }
 0x90f   :  { %2231 = vadd.xlane.f32.xlu0 %v2230_v43 }
 0x910   :  { %v2270_v35 = vsel %vm967_vm5, %v2263_v21, 0.0  ;;  %v2308_v21 = vld [vmem:[#allocation2] sm:$0x1] }
 0x911   :  { %2271 = vadd.xlane.f32.xlu1 %v2270_v35 }
 0x913   :  { %2280 = vadd.xlane.f32.xlu0 %v2279_v29  ;;  %v2312_v29 = vld [vmem:[#allocation3] sm:$0x1] }
 0x915   :  { %2246 = vadd.xlane.f32.xlu1 %v2245_v48 }
 0x917   :  { %2283 = vadd.xlane.f32.xlu0 %v2282_v52 }
 0x919   :  { %2249 = vadd.xlane.f32.xlu1 %v2248_v55 }
 0x91b   :  { %2286 = vadd.xlane.f32.xlu0 %v2285_v58 }
 0x91d   :  { %2289 = vadd.xlane.f32.xlu1 %v2288_v59 }
 0x980   :  { %v2235_v61 = vpop.xlane.xlu0 %2234 }
 0x984   :  { %v2238_v63 = vpop.xlane.xlu1 %2237  ;;  %v2275_v0 = vpop.xlane.xlu0 %2274 }
 0x988   :  { %v2241_v1 = vpop.xlane.xlu1 %2240  ;;  %v2278_v2 = vpop.xlane.xlu0 %2277 }
 0x98c   :  { %v2244_v3 = vpop.xlane.xlu1 %2243 }
 0x998   :  { %v2232_v4 = vpop.xlane.xlu0 %2231 }
 0x999   :  { %v2251_v5 = vadd.f32 %v2235_v61, %v2232_v4 }
 0x99a   :  { %v2272_v7 = vpop.xlane.xlu1 %2271 }
 0x99b   :  { %v2252_v8 = vadd.f32 %v2251_v5, %v2238_v63  ;;  %v2291_v9 = vadd.f32 %v2275_v0, %v2272_v7 }
 0x99c   :  { %v2281_v11 = vpop.xlane.xlu0 %2280 }
 0x99d   :  { %v2292_v12 = vadd.f32 %v2291_v9, %v2278_v2  ;;  %v2253_v13 = vadd.f32 %v2252_v8, %v2241_v1 }
 0x99e   :  { %v2247_v6 = vpop.xlane.xlu1 %2246 }
 0x99f   :  { %v2293_v14 = vadd.f32 %v2292_v12, %v2281_v11  ;;  %v2254_v15 = vadd.f32 %v2253_v13, %v2244_v3 }
 0x9a0   :  { %v2284_v17 = vpop.xlane.xlu0 %2283 }
 0x9a1   :  { %v2255_v19 = vadd.f32 %v2254_v15, %v2247_v6  ;;  %v2294_v23 = vadd.f32 %v2293_v14, %v2284_v17 }
 0x9a2   :  { %v2250_v20 = vpop.xlane.xlu1 %2249 }
 0x9a3   :  { %v2256_v24 = vadd.f32 %v2255_v19, %v2250_v20 }
 0x9a4   :  { %v2287_v49 = vpop.xlane.xlu0 %2286 }
 0x9a5   :  { %v2257_v33 = vrot.slane %v2256_v24, 4  ;;  %v2295_v44 = vadd.f32 %v2294_v23, %v2287_v49 }
 0x9a6   :  { %v2290_v27 = vpop.xlane.xlu1 %2289 }
 0x9a7   :  { %v2258_v18 = vadd.f32 %v2257_v33, %v2256_v24  ;;  %v2296_v28 = vadd.f32 %v2295_v44, %v2290_v27 }
 0x9a9   :  { %v2259_v32 = vrot.slane %v2258_v18, 2  ;;  %v2297_v22 = vrot.slane %v2296_v28, 4 }
 0x9ab   :  { %v2260_v39 = vadd.f32 %v2259_v32, %v2258_v18  ;;  %v2298_v62 = vadd.f32 %v2297_v22, %v2296_v28 }
 0x9ad   :  { %v2261_v31 = vrot.slane %v2260_v39, 1  ;;  %v2299_v47 = vrot.slane %v2298_v62, 2 }
 0x9af   :  { %v2262_v46 = vadd.f32 %v2261_v31, %v2260_v39  ;;  %v2300_v50 = vadd.f32 %v2299_v47, %v2298_v62 }
 0x9b1   :  { %v2304_v37 = vmul.f32 0.0006377551, %v2262_v46  ;;  %v2301_v38 = vrot.slane %v2300_v50, 1 }
 0x9b3   :  { %v2302_v36 = vadd.f32 %v2301_v38, %v2300_v50  ;;  %v2306_v34 = vmul.f32 %v2304_v37, %v2304_v37 }
 0x9b5   :  { %v2305_v40 = vmul.f32 0.0006377551, %v2302_v36 }
 0x9b7   :  { %v2307_v42 = vsub.f32 %v2305_v40, %v2306_v34 }
 0x9b9   :  { %v2309_v43 = vadd.f32 1e-05, %v2307_v42 }
 0x9bb   :  { %2691 = vrsqrt.f32 %v2309_v43 }
 0x9c8   :  { %v2692_v41 = vpop.eup %2691 }
 0x9c9   :  { %v2311_v35 = vmul.f32 %v2692_v41, %v2308_v21 }
 0x9cb   :  { %v2319_v45 = vrot.slane %v2311_v35, %v3498_v57  ;;  %v2313_v48 = vmul.f32 %v2311_v35, %v2304_v37 }
 0x9cd   :  { %2321 = vperm.xlu0 %2685, %v2319_v45   ;;  %v2314_v52 = vsub.f32 %v2312_v29, %v2313_v48 }
 0x9cf   :  { %v2335_v53 = vrot.slane %v2314_v52, %v3498_v57 }
 0x9d1   :  { %2337 = vperm.xlu1 %2686, %v2335_v53  }
 0xa48   :  { %v2322_v55 = vpop.permute.xlu0 %2321 }
 0xa49   :  { %v2324_v56 = vmul.f32 %v2322_v55, %v4575_v26  ;;  %v2325_v58 = vmul.f32 %v2322_v55, %v4553_v10  ;;  %v2326_v59 = vmul.f32 %v2322_v55, %v4559_v16  ;;  %v2327_v60 = vmul.f32 %v2322_v55, %v4566_v51 }
 0xa4a   :  { %v2328_v61 = vmul.f32 %v2322_v55, %v4571_v30  ;;  %v2329_v63 = vmul.f32 %v2322_v55, %v4583_v25  ;;  %v2330_v0 = vmul.f32 %v2322_v55, %v4589_v54 }
 0xa4c   :  { %v2338_v1 = vpop.permute.xlu1 %2337 }
 0xa4d   :  { %v2340_v57 = vadd.f32 %v2338_v1, %v2324_v56  ;;  %v2341_v2 = vadd.f32 %v2338_v1, %v2325_v58  ;;  %v2342_v3 = vadd.f32 %v2338_v1, %v2326_v59  ;;  %v2343_v4 = vadd.f32 %v2338_v1, %v2327_v60 }
 0xa4e   :  { %v2344_v26 = vadd.f32 %v2338_v1, %v2328_v61  ;;  %v2345_v5 = vadd.f32 %v2338_v1, %v2329_v63  ;;  %v2346_v10 = vadd.f32 %v2338_v1, %v2330_v0 }
 0xa4f   :  { %v2347_v7 = vmax.f32 %v2340_v57, 0.0  ;;  %v2348_v16 = vmax.f32 %v2341_v2, 0.0  ;;  %v2349_v8 = vmax.f32 %v2342_v3, 0.0  ;;  %v2350_v51 = vmax.f32 %v2343_v4, 0.0 }
 0xa50   :  { %v2351_v30 = vmax.f32 %v2344_v26, 0.0  ;;  %v2352_v9 = vmax.f32 %v2345_v5, 0.0  ;;  %v2353_v25 = vmax.f32 %v2346_v10, 0.0 }
 0xa51   :  { %2354 = vst.msk [vmem:[#allocation4] sm:$0xff] %vm967_vm5, %v2347_v7  ;;  %2355 = vst.msk [vmem:[#allocation4 + $0x8] sm:$0xff] %vm967_vm5, %v2348_v16 }
 0xa52   :  { %2356 = vst.msk [vmem:[#allocation4 + $0x10] sm:$0xff] %vm967_vm5, %v2349_v8  ;;  %2357 = vst.msk [vmem:[#allocation4 + $0x18] sm:$0xff] %vm967_vm5, %v2350_v51 }
 0xa53   :  { %2358 = vst.msk [vmem:[#allocation4 + $0x20] sm:$0xff] %vm967_vm5, %v2351_v30  ;;  %2359 = vst.msk [vmem:[#allocation4 + $0x28] sm:$0xff] %vm967_vm5, %v2352_v9 }
 0xa54   :  { %2360 = vst.msk [vmem:[#allocation4 + $0x30] sm:$0xff] %vm967_vm5, %v2353_v25 }
 0xa55   :  { %2732 = shalt.err (!%p2729_p4)
}
 0xa56   :  { %s2748_s9 = smov 128   ;;  %s2749_s30 = smov 8  }
 0xa57   :  { %2372 = dma.vmem_to_hbm [thread:$0]  %s2367_s29, 896, %s4634_s14, [#allocation5], %s2748_s9, %s2748_s9, %s2749_s30  }
 0xa58   :  { %2741 = dma.done.wait [#allocation5], 896  }
 0xa59   :  { %2742 = vsyncadd [#allocation5], 4294966400 }
 0xa5a   :  { %2376 = vsyncpa [#allocation5], 1 }

</bundles_post_ra>
